<compile_context>
chip_gen: v7x
topology: tpu7x:2x2x1
jax: 0.10.0
libtpu: 0.0.40
codegen_flags: <defaults>
</compile_context>

<pallas_src>
import functools
import math

import jax
import jax.numpy as jnp
from jax import lax
from jax.experimental import pallas as pl
from jax.experimental.pallas import tpu as pltpu

# Finite mask value: keeps the online softmax NaN-free even for fully masked
# score columns (vs. -inf which gives exp(-inf - -inf) = NaN).
_NEG_BIG = -1e30


def _round_up(n, m):
    return ((n + m - 1) // m) * m


def _default_tiles(n):
    # kv tile: moderate, 256 when possible (fills the 256-wide MXU on v6e/v7x).
    tkv = 256 if n >= 256 else 128
    # q/output tile: large (up to 1024) to amortize per-i work; multiple of tkv.
    cap = min(1024, max(_round_up(n, tkv), tkv))
    tq = tkv
    while tq * 2 <= cap:
        tq *= 2
    return tq, tkv


# ----------------------------------------------------------------------------
# Kernel 1: fused projections + flash attention + output conv + ReLU + residual
#           + per-channel BN statistics.  Grid = (B, q_tiles, kv_tiles).
# ----------------------------------------------------------------------------
def _flash_attn_kernel(x_i_ref, x_j_ref, wk_ref, wqv_ref, wo_ref, bo_ref,
                       y_ref, ssum_ref, ssq_ref,
                       k_scratch, acc_scratch, m_scratch, l_scratch,
                       *, n_heads, f_dim, causal, hw, skip, n_tokens, n_padded):
    i = pl.program_id(1)
    j = pl.program_id(2)
    nj = pl.num_programs(2)
    ch = f_dim // n_heads
    ti = x_i_ref.shape[2]
    tj = x_j_ref.shape[2]
    padded = n_padded > n_tokens            # static python bool

    # ---- init: project K ("query" role) for this output tile, reset softmax state
    @pl.when(j == 0)
    def _init():
        x_i = x_i_ref[0].astype(jnp.bfloat16)                        # (Cin, ti)
        # 1/temperature is pre-folded into wk in the wrapper.
        k_scratch[...] = jnp.dot(wk_ref[...], x_i,
                                 preferred_element_type=jnp.float32
                                 ).astype(jnp.bfloat16)              # (F, ti)
        m_scratch[...] = jnp.full(m_scratch.shape, _NEG_BIG, jnp.float32)
        l_scratch[...] = jnp.zeros(l_scratch.shape, jnp.float32)
        acc_scratch[...] = jnp.zeros(acc_scratch.shape, jnp.float32)

    # ---- one KV tile: fused Q/V projection + online softmax update per head
    def _process_kv_tile():
        x_j = x_j_ref[0]                                             # (Cin, tj) bf16
        qv = jnp.dot(wqv_ref[...], x_j,
                     preferred_element_type=jnp.float32)             # (2F, tj)
        # TODO(synk): per-head bf16 slices assume ch % 16 == 0 (bf16 sublane
        #             packing); other head configs are correct but slower.
        q = qv[:f_dim].astype(jnp.bfloat16)                          # (F, tj)
        v = qv[f_dim:].astype(jnp.bfloat16)                          # (F, tj)

        allowed = None
        if causal or padded:
            jj = lax.broadcasted_iota(jnp.int32, (tj, ti), 0) + j * tj
            if causal:
                ii = lax.broadcasted_iota(jnp.int32, (tj, ti), 1) + i * ti
                allowed = (jj // hw) <= (ii // hw)
            if padded:
                kv_valid = jj < n_tokens
                allowed = kv_valid if allowed is None else jnp.logical_and(
                    allowed, kv_valid)

        for h in range(n_heads):
            q_h = q[h * ch:(h + 1) * ch]                             # (ch, tj)
            v_h = v[h * ch:(h + 1) * ch]                             # (ch, tj)
            k_h = k_scratch[h * ch:(h + 1) * ch, :]                  # (ch, ti)
            # s[jj, ii] = sum_c Q[c, jj] * K[c, ii]
            s = lax.dot_general(q_h, k_h, (((0,), (0,)), ((), ())),
                                preferred_element_type=jnp.float32)  # (tj, ti)
            if allowed is not None:
                s = jnp.where(allowed, s, _NEG_BIG)

            m_prev = m_scratch[h:h + 1, :]                           # (1, ti)
            l_prev = l_scratch[h:h + 1, :]
            m_new = jnp.maximum(m_prev, jnp.max(s, axis=0, keepdims=True))
            alpha = jnp.exp(m_prev - m_new)
            p = jnp.exp(s - m_new)                                   # (tj, ti)
            l_scratch[h:h + 1, :] = alpha * l_prev + jnp.sum(p, axis=0,
                                                             keepdims=True)
            pv = jnp.dot(v_h, p.astype(jnp.bfloat16),
                         preferred_element_type=jnp.float32)         # (ch, ti)
            acc_scratch[h * ch:(h + 1) * ch, :] = (
                alpha * acc_scratch[h * ch:(h + 1) * ch, :] + pv)
            m_scratch[h:h + 1, :] = m_new

    if causal:
        # skip KV tiles entirely in the masked (future-frame) region; their x_j
        # DMA is also suppressed by the clamped index_map in the wrapper.
        tile_live = (j * tj) // hw <= (i * ti + (ti - 1)) // hw
        pl.when(tile_live)(_process_kv_tile)
    else:
        _process_kv_tile()

    # ---- finalize: normalize, single F-deep output projection, ReLU, residual,
    #      BN statistics (computed in f32 before the bf16 y store).
    @pl.when(j == nj - 1)
    def _finalize():
        # normalize each head into k_scratch (no longer needed) -> one matmul
        for h in range(n_heads):
            inv_l = 1.0 / l_scratch[h:h + 1, :]       # exact divide, once per tile
            k_scratch[h * ch:(h + 1) * ch, :] = (
                acc_scratch[h * ch:(h + 1) * ch, :] * inv_l).astype(jnp.bfloat16)
        y = jnp.dot(wo_ref[...], k_scratch[...],
                    preferred_element_type=jnp.float32) + bo_ref[...]  # (Cout, ti)
        y = jnp.maximum(y, 0.0)                        # ReLU
        # TODO(synk): Dropout3d has p=0 in this configuration -> identity.
        if skip:
            y = y + x_i_ref[0]                         # residual (exact f32 x)
        if padded:
            col = lax.broadcasted_iota(jnp.int32, y.shape, 1) + i * ti
            y = jnp.where(col < n_tokens, y, 0.0)      # exclude pad tokens
        y_ref[0] = y.astype(y_ref.dtype)
        ssum_ref[0, 0] = jnp.sum(y, axis=1, keepdims=True)            # (Cout, 1)
        ssq_ref[0, 0] = jnp.sum(y * y, axis=1, keepdims=True)         # (Cout, 1)


# ----------------------------------------------------------------------------
# Kernel 2: BatchNorm3d normalize-only (scale/shift precomputed from the fused
#           statistics).  Grid = (B, token_slabs) with large lane-dense blocks.
# ----------------------------------------------------------------------------
def _bn_apply_kernel(y_ref, scale_ref, shift_ref, o_ref):
    o_ref[0] = y_ref[0].astype(jnp.float32) * scale_ref[...] + shift_ref[...]


# ----------------------------------------------------------------------------
# Wrapper
# ----------------------------------------------------------------------------
def non_local_layer(x_ncthw, params, *, n_heads, temperature, causal=False,
                    eps=1e-5, tile_q=None, tile_kv=None):
    B, Cin, T, H, W = x_ncthw.shape
    N = T * H * W
    Fdim = params["wk"].shape[0]
    Cout = params["wo"].shape[0]
    assert Fdim % n_heads == 0
    skip = (Cout == Cin)
    hw = H * W

    auto_q = tile_q is None
    if tile_q is None or tile_kv is None:
        dq, dkv = _default_tiles(N)
        tile_q = dq if tile_q is None else tile_q
        tile_kv = dkv if tile_kv is None else tile_kv
    assert tile_q % 128 == 0 and tile_kv % 128 == 0
    assert tile_q % tile_kv == 0
    if auto_q:
        # v7x has 2 TensorCores: keep >= 2 parallel (b, i) grid points if we can.
        while B * (_round_up(N, tile_q) // tile_q) < 2 and tile_q > tile_kv:
            tile_q //= 2

    Np = _round_up(N, tile_q)
    num_ti = Np // tile_q
    num_tj = Np // tile_kv

    # NCDHW -> (B, Cin, N): pure reshape (channel-first kept), pad tokens to Np.
    xf = x_ncthw.reshape(B, Cin, N).astype(jnp.float32)
    if Np != N:
        xf = jnp.pad(xf, ((0, 0), (0, 0), (0, Np - N)))
    x_bf = xf.astype(jnp.bfloat16)   # kv-role stream: re-read num_ti times/batch

    # Host-side weight prep: fold 1/temperature into K, fuse Q|V, cast to bf16.
    wk_s = (params["wk"] / temperature).astype(jnp.bfloat16)        # (F, Cin)
    wqv = jnp.concatenate([params["wq"], params["wv"]],
                          axis=0).astype(jnp.bfloat16)              # (2F, Cin)
    wo = params["wo"].astype(jnp.bfloat16)                          # (Cout, F)
    bo = params["bo"].reshape(Cout, 1).astype(jnp.float32)

    if causal:
        # Clamp dead kv-tile indices to the last live tile -> no new DMA issued.
        def xj_map(b, i, j, _ti=tile_q, _tj=tile_kv, _hw=hw):
            last_tok = ((i * _ti + _ti - 1) // _hw + 1) * _hw - 1
            return (b, 0, jnp.minimum(j, last_tok // _tj))
    else:
        xj_map = lambda b, i, j: (b, 0, j)

    kernel = functools.partial(
        _flash_attn_kernel, n_heads=n_heads, f_dim=Fdim, causal=causal,
        hw=hw, skip=skip, n_tokens=N, n_padded=Np)

    # Honest VMEM footprint (double-buffered blocks + weights + scratch) with
    # headroom, instead of a blanket limit (v7x only has 64 MiB per TC).
    est = (2 * (Cin * tile_q * 4          # x_i block (f32)
                + Cin * tile_kv * 2       # x_j block (bf16)
                + Cout * tile_q * 2       # y block (bf16)
                + 3 * Fdim * Cin * 2 + Cout * Fdim * 2 + Cout * 4   # weights
                + 2 * Cout * 4)           # stats blocks
           + Fdim * tile_q * (2 + 4)      # k (bf16) + acc (f32) scratch
           + 2 * n_heads * tile_q * 4     # m + l scratch
           + 4 * tile_kv * tile_q * 4)    # score/p temporaries headroom
    vmem_limit = int(min(max(2 * est, 16 * 1024 * 1024), 64 * 1024 * 1024))

    y, ssum, ssq = pl.pallas_call(
        kernel,
        out_shape=(
            jax.ShapeDtypeStruct((B, Cout, Np), jnp.bfloat16),       # bf16 y
            jax.ShapeDtypeStruct((B, num_ti, Cout, 1), jnp.float32),  # sum
            jax.ShapeDtypeStruct((B, num_ti, Cout, 1), jnp.float32),  # sum sq
        ),
        grid=(B, num_ti, num_tj),
        in_specs=[
            pl.BlockSpec((1, Cin, tile_q), lambda b, i, j: (b, 0, i)),   # x_i (f32)
            pl.BlockSpec((1, Cin, tile_kv), xj_map),                     # x_j (bf16)
            pl.BlockSpec((Fdim, Cin), lambda b, i, j: (0, 0)),           # wk/temp
            pl.BlockSpec((2 * Fdim, Cin), lambda b, i, j: (0, 0)),       # [wq; wv]
            pl.BlockSpec((Cout, Fdim), lambda b, i, j: (0, 0)),          # wo
            pl.BlockSpec((Cout, 1), lambda b, i, j: (0, 0)),             # bo
        ],
        out_specs=(
            pl.BlockSpec((1, Cout, tile_q), lambda b, i, j: (b, 0, i)),
            pl.BlockSpec((1, 1, Cout, 1), lambda b, i, j: (b, i, 0, 0)),
            pl.BlockSpec((1, 1, Cout, 1), lambda b, i, j: (b, i, 0, 0)),
        ),
        scratch_shapes=[
            pltpu.VMEM((Fdim, tile_q), jnp.bfloat16),     # K ("query" role)
            pltpu.VMEM((Fdim, tile_q), jnp.float32),      # output accumulator
            pltpu.VMEM((n_heads, tile_q), jnp.float32),   # running max m
            pltpu.VMEM((n_heads, tile_q), jnp.float32),   # running denom l
        ],
        compiler_params=pltpu.CompilerParams(
            dimension_semantics=("parallel", "parallel", "arbitrary"),
            vmem_limit_bytes=vmem_limit),
    )(xf, x_bf, wk_s, wqv, wo, bo)

    # BatchNorm3d (training mode: biased batch statistics over B and real tokens).
    # TODO(synk): running_mean / running_var buffer updates are a stateful side
    #             effect of nn.BatchNorm3d and are not reproduced here.
    cnt = float(B * N)
    tot_sum = jnp.sum(ssum, axis=(0, 1))[:, 0]                       # (Cout,)
    tot_sq = jnp.sum(ssq, axis=(0, 1))[:, 0]
    mean = tot_sum / cnt
    var = jnp.maximum(tot_sq / cnt - mean * mean, 0.0)
    inv_std = lax.rsqrt(var + eps)
    scale = (params["gamma"] * inv_std).reshape(Cout, 1).astype(jnp.float32)
    shift = (params["beta"] - mean * params["gamma"] * inv_std
             ).reshape(Cout, 1).astype(jnp.float32)

    # BN apply with large lane-dense blocks (pure scale+shift, memory bound).
    bn_tile = Np
    for t in (32768, 16384, 8192, 4096, 2048, 1024, 512, 256, 128):
        if Np >= t and Np % t == 0:
            bn_tile = t
            break

    out = pl.pallas_call(
        _bn_apply_kernel,
        out_shape=jax.ShapeDtypeStruct((B, Cout, Np), jnp.float32),
        grid=(B, Np // bn_tile),
        in_specs=[
            pl.BlockSpec((1, Cout, bn_tile), lambda b, i: (b, 0, i)),
            pl.BlockSpec((Cout, 1), lambda b, i: (0, 0)),
            pl.BlockSpec((Cout, 1), lambda b, i: (0, 0)),
        ],
        out_specs=pl.BlockSpec((1, Cout, bn_tile), lambda b, i: (b, 0, i)),
        compiler_params=pltpu.CompilerParams(
            dimension_semantics=("parallel", "parallel")),
    )(y, scale, shift)

    if Np != N:
        out = out[:, :, :N]
    return out.reshape(B, Cout, T, H, W)


# ----------------------------------------------------------------------------
# Pure-JAX f32 reference (mirrors the PyTorch forward) for correctness check.
# ----------------------------------------------------------------------------
def reference_forward(x, params, *, n_heads, temperature, causal=False, eps=1e-5):
    B, Cin, T, H, W = x.shape
    N = T * H * W
    xf = x.reshape(B, Cin, N).astype(jnp.float32)
    F_ = params["wk"].shape[0]
    ch = F_ // n_heads

    K = jnp.einsum("fc,bcn->bfn", params["wk"], xf).reshape(B, n_heads, ch, N)
    Q = jnp.einsum("fc,bcn->bfn", params["wq"], xf).reshape(B, n_heads, ch, N)
    V = jnp.einsum("fc,bcn->bfn", params["wv"], xf).reshape(B, n_heads, ch, N)

    KQ = jnp.einsum("bnci,bncj->bnij", K, Q) / temperature
    if causal:
        fi = jnp.arange(N)[:, None] // (H * W)
        fj = jnp.arange(N)[None, :] // (H * W)
        KQ = jnp.where(fj <= fi, KQ, -jnp.inf)
    attn = jax.nn.softmax(KQ, axis=3)
    Vo = jnp.einsum("bncj,bnij->bnci", V, attn).reshape(B, F_, N)

    out = jnp.einsum("of,bfn->bon", params["wo"], Vo) + params["bo"].reshape(1, -1, 1)
    out = jnp.maximum(out, 0.0)
    if params["wo"].shape[0] == Cin:
        out = out + xf
    out = out.reshape(B, -1, T, H, W)

    mean = out.mean(axis=(0, 2, 3, 4), keepdims=True)
    var = ((out - mean) ** 2).mean(axis=(0, 2, 3, 4), keepdims=True)
    g = params["gamma"].reshape(1, -1, 1, 1, 1)
    b = params["beta"].reshape(1, -1, 1, 1, 1)
    return (out - mean) * lax.rsqrt(var + eps) * g + b


if __name__ == "__main__":
    # Small shapes consistent with the module: NonLocalLayer(in_dim=4, out_dim=4,
    # feedforward_dim=32, n_heads=2), input (B=2, C=4, T=4, H=8, W=8) -> N=256.
    # tile_q=256 / tile_kv=128 exercises the multi-kv-tile online-softmax path
    # with a larger (decoupled) output tile.
    B, Cin, T, H, W = 2, 4, 4, 8, 8
    Fdim, Cout, n_heads = 32, 4, 2
    temperature = math.sqrt(Cin)

    key = jax.random.PRNGKey(0)
    ks = jax.random.split(key, 8)
    params = {
        "wk": 0.1 * jax.random.normal(ks[0], (Fdim, Cin), jnp.float32),
        "wq": 0.1 * jax.random.normal(ks[1], (Fdim, Cin), jnp.float32),
        "wv": 0.1 * jax.random.normal(ks[2], (Fdim, Cin), jnp.float32),
        "wo": 0.1 * jax.random.normal(ks[3], (Cout, Fdim), jnp.float32),
        "bo": 0.1 * jax.random.normal(ks[4], (Cout,), jnp.float32),
        "gamma": 1.0 + 0.1 * jax.random.normal(ks[5], (Cout,), jnp.float32),
        "beta": 0.1 * jax.random.normal(ks[6], (Cout,), jnp.float32),
    }
    x = jax.random.normal(ks[7], (B, Cin, T, H, W), jnp.float32)

    fwd = jax.jit(functools.partial(non_local_layer, n_heads=n_heads,
                                    temperature=temperature, causal=False,
                                    tile_q=256, tile_kv=128))
    out = jax.block_until_ready(fwd(x, params))

    ref = reference_forward(x, params, n_heads=n_heads,
                            temperature=temperature, causal=False)
    assert out.shape == (B, Cout, T, H, W)
    max_err = float(jnp.max(jnp.abs(out - ref)))
    # bf16 MXU operands + bf16 y intermediate => compare against the f32
    # reference with a correspondingly relaxed tolerance.
    assert jnp.allclose(out, ref, atol=3e-2, rtol=3e-2), \
        f"Pallas output mismatch vs reference (max abs err {max_err})"

    print("KERNEL_OK")
</pallas_src>

<mosaic_0001>
module attributes {stable_mosaic.version = 11 : i64} {
  func.func @_bn_apply_kernel(%arg0: i32, %arg1: i32, %arg2: memref<1x4x256xbf16, #tpu.memory_space<vmem>>, %arg3: memref<4x1xf32, #tpu.memory_space<vmem>>, %arg4: memref<4x1xf32, #tpu.memory_space<vmem>>, %arg5: memref<1x4x256xf32, #tpu.memory_space<vmem>>) attributes {dimension_semantics = [#tpu.dimension_semantics<parallel>, #tpu.dimension_semantics<parallel>], iteration_bounds = array<i64: 2, 1>, scalar_prefetch = 0 : i64, scratch_operands = 0 : i64, tpu.core_type = #tpu.core_type<tc>, window_params = [{transform_indices = @transform_0, window_bounds = array<i64: 1, 4, 256>}, {pipeline_mode = #tpu.pipeline_mode<synchronous>, transform_indices = @transform_1, window_bounds = array<i64: 4, 1>}, {pipeline_mode = #tpu.pipeline_mode<synchronous>, transform_indices = @transform_2, window_bounds = array<i64: 4, 1>}, {transform_indices = @transform_3, window_bounds = array<i64: 1, 4, 256>}]} {
    %c0 = arith.constant 0 : index
    %c0_0 = arith.constant 0 : index
    %c0_1 = arith.constant 0 : index
    %0 = vector.load %arg2[%c0, %c0_0, %c0_1] : memref<1x4x256xbf16, #tpu.memory_space<vmem>>, vector<1x4x256xbf16>
    %1 = vector.shape_cast %0 : vector<1x4x256xbf16> to vector<4x256xbf16>
    %2 = arith.extf %1 : vector<4x256xbf16> to vector<4x256xf32>
    %c0_2 = arith.constant 0 : index
    %c0_3 = arith.constant 0 : index
    %3 = vector.load %arg3[%c0_2, %c0_3] : memref<4x1xf32, #tpu.memory_space<vmem>>, vector<4x1xf32>
    %4 = vector.broadcast %3 : vector<4x1xf32> to vector<4x256xf32>
    %5 = arith.mulf %2, %4 : vector<4x256xf32>
    %c0_4 = arith.constant 0 : index
    %c0_5 = arith.constant 0 : index
    %6 = vector.load %arg4[%c0_4, %c0_5] : memref<4x1xf32, #tpu.memory_space<vmem>>, vector<4x1xf32>
    %7 = vector.broadcast %6 : vector<4x1xf32> to vector<4x256xf32>
    %8 = arith.addf %5, %7 : vector<4x256xf32>
    %c0_6 = arith.constant 0 : index
    %c0_7 = arith.constant 0 : index
    %c0_8 = arith.constant 0 : index
    %9 = vector.load %arg5[%c0_6, %c0_7, %c0_8] : memref<1x4x256xf32, #tpu.memory_space<vmem>>, vector<1x4x256xf32>
    %10 = vector.shape_cast %9 : vector<1x4x256xf32> to vector<4x256xf32>
    %11 = vector.shape_cast %8 : vector<4x256xf32> to vector<1x4x256xf32>
    tpu.vector_store %arg5[%c0_6, %c0_7, %c0_8], %11 {strides = array<i32>} : memref<1x4x256xf32, #tpu.memory_space<vmem>>, vector<1x4x256xf32>,
    return
  }
  func.func @transform_0(%arg0: i32, %arg1: i32) -> (i32, i32, i32) {
    %c0_i32 = arith.constant 0 : i32
    %c0_i32_0 = arith.constant 0 : i32
    return %arg0, %c0_i32, %arg1 : i32, i32, i32
  }
  func.func @transform_1(%arg0: i32, %arg1: i32) -> (i32, i32) {
    %c0_i32 = arith.constant 0 : i32
    %c0_i32_0 = arith.constant 0 : i32
    %c0_i32_1 = arith.constant 0 : i32
    return %c0_i32, %c0_i32_0 : i32, i32
  }
  func.func @transform_2(%arg0: i32, %arg1: i32) -> (i32, i32) {
    %c0_i32 = arith.constant 0 : i32
    %c0_i32_0 = arith.constant 0 : i32
    %c0_i32_1 = arith.constant 0 : i32
    return %c0_i32, %c0_i32_0 : i32, i32
  }
  func.func @transform_3(%arg0: i32, %arg1: i32) -> (i32, i32, i32) {
    %c0_i32 = arith.constant 0 : i32
    %c0_i32_0 = arith.constant 0 : i32
    return %arg0, %c0_i32, %arg1 : i32, i32, i32
  }
}

module attributes {stable_mosaic.version = 11 : i64} {
  func.func @_flash_attn_kernel(%arg0: i32, %arg1: i32, %arg2: i32, %arg3: memref<1x4x256xf32, #tpu.memory_space<vmem>>, %arg4: memref<1x4x128xbf16, #tpu.memory_space<vmem>>, %arg5: memref<32x4xbf16, #tpu.memory_space<vmem>>, %arg6: memref<64x4xbf16, #tpu.memory_space<vmem>>, %arg7: memref<4x32xbf16, #tpu.memory_space<vmem>>, %arg8: memref<4x1xf32, #tpu.memory_space<vmem>>, %arg9: memref<1x4x256xbf16, #tpu.memory_space<vmem>>, %arg10: memref<1x1x4x1xf32, #tpu.memory_space<vmem>>, %arg11: memref<1x1x4x1xf32, #tpu.memory_space<vmem>>, %arg12: memref<32x256xbf16, #tpu.memory_space<vmem>>, %arg13: memref<32x256xf32, #tpu.memory_space<vmem>>, %arg14: memref<2x256xf32, #tpu.memory_space<vmem>>, %arg15: memref<2x256xf32, #tpu.memory_space<vmem>>) attributes {dimension_semantics = [#tpu.dimension_semantics<parallel>, #tpu.dimension_semantics<parallel>, #tpu.dimension_semantics<arbitrary>], iteration_bounds = array<i64: 2, 1, 2>, scalar_prefetch = 0 : i64, scratch_operands = 4 : i64, tpu.core_type = #tpu.core_type<tc>, window_params = [{transform_indices = @transform_0, window_bounds = array<i64: 1, 4, 256>}, {transform_indices = @transform_1, window_bounds = array<i64: 1, 4, 128>}, {pipeline_mode = #tpu.pipeline_mode<synchronous>, transform_indices = @transform_2, window_bounds = array<i64: 32, 4>}, {pipeline_mode = #tpu.pipeline_mode<synchronous>, transform_indices = @transform_3, window_bounds = array<i64: 64, 4>}, {pipeline_mode = #tpu.pipeline_mode<synchronous>, transform_indices = @transform_4, window_bounds = array<i64: 4, 32>}, {pipeline_mode = #tpu.pipeline_mode<synchronous>, transform_indices = @transform_5, window_bounds = array<i64: 4, 1>}, {transform_indices = @transform_6, window_bounds = array<i64: 1, 4, 256>}, {transform_indices = @transform_7, window_bounds = array<i64: 1, 1, 4, 1>}, {transform_indices = @transform_8, window_bounds = array<i64: 1, 1, 4, 1>}]} {
    %c0_i32 = arith.constant 0 : i32
    %0 = arith.cmpi eq, %arg2, %c0_i32 : i32
    %1 = arith.extui %0 : i1 to i32
    %c0_i32_0 = arith.constant 0 : i32
    %2 = arith.cmpi ne, %1, %c0_i32_0 : i32
    scf.if %2 {
      %c0_40 = arith.constant 0 : index
      %c0_41 = arith.constant 0 : index
      %c0_42 = arith.constant 0 : index
      %68 = vector.load %arg3[%c0_40, %c0_41, %c0_42] : memref<1x4x256xf32, #tpu.memory_space<vmem>>, vector<1x4x256xf32>
      %69 = vector.shape_cast %68 : vector<1x4x256xf32> to vector<4x256xf32>
      %70 = arith.truncf %69 : vector<4x256xf32> to vector<4x256xbf16>
      %c0_43 = arith.constant 0 : index
      %c0_44 = arith.constant 0 : index
      %71 = vector.load %arg5[%c0_43, %c0_44] : memref<32x4xbf16, #tpu.memory_space<vmem>>, vector<32x4xbf16>
      %cst_45 = arith.constant dense<0.000000e+00> : vector<32x256xf32>
      %72 = tpu.matmul %71, %70, %cst_45 {dimension_numbers = #tpu.dot_dimension_numbers<[1], [0], [0], [1], [0, 0, 1, 1], [], []>} : vector<32x4xbf16>, vector<4x256xbf16>, vector<32x256xf32> -> vector<32x256xf32>
      %73 = arith.truncf %72 : vector<32x256xf32> to vector<32x256xbf16>
      %c0_46 = arith.constant 0 : index
      %c0_47 = arith.constant 0 : index
      %74 = vector.load %arg12[%c0_46, %c0_47] : memref<32x256xbf16, #tpu.memory_space<vmem>>, vector<32x256xbf16>
      tpu.vector_store %arg12[%c0_46, %c0_47], %73 {strides = array<i32>} : memref<32x256xbf16, #tpu.memory_space<vmem>>, vector<32x256xbf16>,
      %cst_48 = arith.constant -1.000000e+30 : f32
      %75 = vector.broadcast %cst_48 : f32 to vector<2x256xf32>
      %c0_49 = arith.constant 0 : index
      %c0_50 = arith.constant 0 : index
      %76 = vector.load %arg14[%c0_49, %c0_50] : memref<2x256xf32, #tpu.memory_space<vmem>>, vector<2x256xf32>
      tpu.vector_store %arg14[%c0_49, %c0_50], %75 {strides = array<i32>} : memref<2x256xf32, #tpu.memory_space<vmem>>, vector<2x256xf32>,
      %cst_51 = arith.constant 0.000000e+00 : f32
      %77 = vector.broadcast %cst_51 : f32 to vector<2x256xf32>
      %c0_52 = arith.constant 0 : index
      %c0_53 = arith.constant 0 : index
      %78 = vector.load %arg15[%c0_52, %c0_53] : memref<2x256xf32, #tpu.memory_space<vmem>>, vector<2x256xf32>
      tpu.vector_store %arg15[%c0_52, %c0_53], %77 {strides = array<i32>} : memref<2x256xf32, #tpu.memory_space<vmem>>, vector<2x256xf32>,
      %cst_54 = arith.constant 0.000000e+00 : f32
      %79 = vector.broadcast %cst_54 : f32 to vector<32x256xf32>
      %c0_55 = arith.constant 0 : index
      %c0_56 = arith.constant 0 : index
      %80 = vector.load %arg13[%c0_55, %c0_56] : memref<32x256xf32, #tpu.memory_space<vmem>>, vector<32x256xf32>
      tpu.vector_store %arg13[%c0_55, %c0_56], %79 {strides = array<i32>} : memref<32x256xf32, #tpu.memory_space<vmem>>, vector<32x256xf32>,
    } else {
    }
    %c0 = arith.constant 0 : index
    %c0_1 = arith.constant 0 : index
    %c0_2 = arith.constant 0 : index
    %3 = vector.load %arg4[%c0, %c0_1, %c0_2] : memref<1x4x128xbf16, #tpu.memory_space<vmem>>, vector<1x4x128xbf16>
    %4 = vector.shape_cast %3 : vector<1x4x128xbf16> to vector<4x128xbf16>
    %c0_3 = arith.constant 0 : index
    %c0_4 = arith.constant 0 : index
    %5 = vector.load %arg6[%c0_3, %c0_4] : memref<64x4xbf16, #tpu.memory_space<vmem>>, vector<64x4xbf16>
    %cst = arith.constant dense<0.000000e+00> : vector<64x128xf32>
    %6 = tpu.matmul %5, %4, %cst {dimension_numbers = #tpu.dot_dimension_numbers<[1], [0], [0], [1], [0, 0, 1, 1], [], []>} : vector<64x4xbf16>, vector<4x128xbf16>, vector<64x128xf32> -> vector<64x128xf32>
    %7 = vector.extract_strided_slice %6 {offsets = [0, 0], sizes = [32, 128], strides = [1, 1]} : vector<64x128xf32> to vector<32x128xf32>
    %8 = arith.truncf %7 : vector<32x128xf32> to vector<32x128xbf16>
    %9 = vector.extract_strided_slice %6 {offsets = [32, 0], sizes = [32, 128], strides = [1, 1]} : vector<64x128xf32> to vector<32x128xf32>
    %10 = arith.truncf %9 : vector<32x128xf32> to vector<32x128xbf16>
    %11 = vector.extract_strided_slice %8 {offsets = [0, 0], sizes = [16, 128], strides = [1, 1]} : vector<32x128xbf16> to vector<16x128xbf16>
    %12 = vector.extract_strided_slice %10 {offsets = [0, 0], sizes = [16, 128], strides = [1, 1]} : vector<32x128xbf16> to vector<16x128xbf16>
    %c0_5 = arith.constant 0 : index
    %c0_6 = arith.constant 0 : index
    %13 = vector.load %arg12[%c0_5, %c0_6] : memref<32x256xbf16, #tpu.memory_space<vmem>>, vector<16x256xbf16>
    %cst_7 = arith.constant dense<0.000000e+00> : vector<128x256xf32>
    %14 = tpu.matmul %11, %13, %cst_7 {dimension_numbers = #tpu.dot_dimension_numbers<[0], [0], [1], [1], [0, 1, 1, 1], [], []>} : vector<16x128xbf16>, vector<16x256xbf16>, vector<128x256xf32> -> vector<128x256xf32>
    %c0_8 = arith.constant 0 : index
    %c0_9 = arith.constant 0 : index
    %15 = vector.load %arg14[%c0_8, %c0_9] : memref<2x256xf32, #tpu.memory_space<vmem>>, vector<1x256xf32>
    %c0_10 = arith.constant 0 : index
    %c0_11 = arith.constant 0 : index
    %16 = vector.load %arg15[%c0_10, %c0_11] : memref<2x256xf32, #tpu.memory_space<vmem>>, vector<1x256xf32>
    %cst_12 = arith.constant dense<0xFF800000> : vector<256xf32>
    %17 = vector.multi_reduction <maximumf>, %14, %cst_12 [0] : vector<128x256xf32> to vector<256xf32>
    %18 = vector.shape_cast %17 : vector<256xf32> to vector<1x256xf32>
    %19 = arith.maximumf %15, %18 : vector<1x256xf32>
    %20 = arith.subf %15, %19 : vector<1x256xf32>
    %21 = math.exp %20 : vector<1x256xf32>
    %22 = vector.broadcast %19 : vector<1x256xf32> to vector<128x256xf32>
    %23 = arith.subf %14, %22 : vector<128x256xf32>
    %24 = math.exp %23 : vector<128x256xf32>
    %25 = arith.mulf %21, %16 : vector<1x256xf32>
    %cst_13 = arith.constant dense<0.000000e+00> : vector<256xf32>
    %26 = vector.multi_reduction <add>, %24, %cst_13 [0] : vector<128x256xf32> to vector<256xf32>
    %27 = vector.shape_cast %26 : vector<256xf32> to vector<1x256xf32>
    %28 = arith.addf %25, %27 : vector<1x256xf32>
    %c0_14 = arith.constant 0 : index
    %c0_15 = arith.constant 0 : index
    %29 = vector.load %arg15[%c0_14, %c0_15] : memref<2x256xf32, #tpu.memory_space<vmem>>, vector<1x256xf32>
    tpu.vector_store %arg15[%c0_14, %c0_15], %28 {strides = array<i32>} : memref<2x256xf32, #tpu.memory_space<vmem>>, vector<1x256xf32>,
    %30 = arith.truncf %24 : vector<128x256xf32> to vector<128x256xbf16>
    %cst_16 = arith.constant dense<0.000000e+00> : vector<16x256xf32>
    %31 = tpu.matmul %12, %30, %cst_16 {dimension_numbers = #tpu.dot_dimension_numbers<[1], [0], [0], [1], [0, 0, 1, 1], [], []>} : vector<16x128xbf16>, vector<128x256xbf16>, vector<16x256xf32> -> vector<16x256xf32>
    %c0_17 = arith.constant 0 : index
    %c0_18 = arith.constant 0 : index
    %32 = vector.load %arg13[%c0_17, %c0_18] : memref<32x256xf32, #tpu.memory_space<vmem>>, vector<16x256xf32>
    %33 = vector.broadcast %21 : vector<1x256xf32> to vector<16x256xf32>
    %34 = arith.mulf %33, %32 : vector<16x256xf32>
    %35 = arith.addf %34, %31 : vector<16x256xf32>
    %c0_19 = arith.constant 0 : index
    %c0_20 = arith.constant 0 : index
    %36 = vector.load %arg13[%c0_19, %c0_20] : memref<32x256xf32, #tpu.memory_space<vmem>>, vector<16x256xf32>
    tpu.vector_store %arg13[%c0_19, %c0_20], %35 {strides = array<i32>} : memref<32x256xf32, #tpu.memory_space<vmem>>, vector<16x256xf32>,
    %c0_21 = arith.constant 0 : index
    %c0_22 = arith.constant 0 : index
    %37 = vector.load %arg14[%c0_21, %c0_22] : memref<2x256xf32, #tpu.memory_space<vmem>>, vector<1x256xf32>
    tpu.vector_store %arg14[%c0_21, %c0_22], %19 {strides = array<i32>} : memref<2x256xf32, #tpu.memory_space<vmem>>, vector<1x256xf32>,
    %38 = vector.extract_strided_slice %8 {offsets = [16, 0], sizes = [16, 128], strides = [1, 1]} : vector<32x128xbf16> to vector<16x128xbf16>
    %39 = vector.extract_strided_slice %10 {offsets = [16, 0], sizes = [16, 128], strides = [1, 1]} : vector<32x128xbf16> to vector<16x128xbf16>
    %c16 = arith.constant 16 : index
    %c0_23 = arith.constant 0 : index
    %40 = vector.load %arg12[%c16, %c0_23] : memref<32x256xbf16, #tpu.memory_space<vmem>>, vector<16x256xbf16>
    %cst_24 = arith.constant dense<0.000000e+00> : vector<128x256xf32>
    %41 = tpu.matmul %38, %40, %cst_24 {dimension_numbers = #tpu.dot_dimension_numbers<[0], [0], [1], [1], [0, 1, 1, 1], [], []>} : vector<16x128xbf16>, vector<16x256xbf16>, vector<128x256xf32> -> vector<128x256xf32>
    %c1 = arith.constant 1 : index
    %c0_25 = arith.constant 0 : index
    %42 = vector.load %arg14[%c1, %c0_25] : memref<2x256xf32, #tpu.memory_space<vmem>>, vector<1x256xf32>
    %c1_26 = arith.constant 1 : index
    %c0_27 = arith.constant 0 : index
    %43 = vector.load %arg15[%c1_26, %c0_27] : memref<2x256xf32, #tpu.memory_space<vmem>>, vector<1x256xf32>
    %cst_28 = arith.constant dense<0xFF800000> : vector<256xf32>
    %44 = vector.multi_reduction <maximumf>, %41, %cst_28 [0] : vector<128x256xf32> to vector<256xf32>
    %45 = vector.shape_cast %44 : vector<256xf32> to vector<1x256xf32>
    %46 = arith.maximumf %42, %45 : vector<1x256xf32>
    %47 = arith.subf %42, %46 : vector<1x256xf32>
    %48 = math.exp %47 : vector<1x256xf32>
    %49 = vector.broadcast %46 : vector<1x256xf32> to vector<128x256xf32>
    %50 = arith.subf %41, %49 : vector<128x256xf32>
    %51 = math.exp %50 : vector<128x256xf32>
    %52 = arith.mulf %48, %43 : vector<1x256xf32>
    %cst_29 = arith.constant dense<0.000000e+00> : vector<256xf32>
    %53 = vector.multi_reduction <add>, %51, %cst_29 [0] : vector<128x256xf32> to vector<256xf32>
    %54 = vector.shape_cast %53 : vector<256xf32> to vector<1x256xf32>
    %55 = arith.addf %52, %54 : vector<1x256xf32>
    %c1_30 = arith.constant 1 : index
    %c0_31 = arith.constant 0 : index
    %56 = vector.load %arg15[%c1_30, %c0_31] : memref<2x256xf32, #tpu.memory_space<vmem>>, vector<1x256xf32>
    tpu.vector_store %arg15[%c1_30, %c0_31], %55 {strides = array<i32>} : memref<2x256xf32, #tpu.memory_space<vmem>>, vector<1x256xf32>,
    %57 = arith.truncf %51 : vector<128x256xf32> to vector<128x256xbf16>
    %cst_32 = arith.constant dense<0.000000e+00> : vector<16x256xf32>
    %58 = tpu.matmul %39, %57, %cst_32 {dimension_numbers = #tpu.dot_dimension_numbers<[1], [0], [0], [1], [0, 0, 1, 1], [], []>} : vector<16x128xbf16>, vector<128x256xbf16>, vector<16x256xf32> -> vector<16x256xf32>
    %c16_33 = arith.constant 16 : index
    %c0_34 = arith.constant 0 : index
    %59 = vector.load %arg13[%c16_33, %c0_34] : memref<32x256xf32, #tpu.memory_space<vmem>>, vector<16x256xf32>
    %60 = vector.broadcast %48 : vector<1x256xf32> to vector<16x256xf32>
    %61 = arith.mulf %60, %59 : vector<16x256xf32>
    %62 = arith.addf %61, %58 : vector<16x256xf32>
    %c16_35 = arith.constant 16 : index
    %c0_36 = arith.constant 0 : index
    %63 = vector.load %arg13[%c16_35, %c0_36] : memref<32x256xf32, #tpu.memory_space<vmem>>, vector<16x256xf32>
    tpu.vector_store %arg13[%c16_35, %c0_36], %62 {strides = array<i32>} : memref<32x256xf32, #tpu.memory_space<vmem>>, vector<16x256xf32>,
    %c1_37 = arith.constant 1 : index
    %c0_38 = arith.constant 0 : index
    %64 = vector.load %arg14[%c1_37, %c0_38] : memref<2x256xf32, #tpu.memory_space<vmem>>, vector<1x256xf32>
    tpu.vector_store %arg14[%c1_37, %c0_38], %46 {strides = array<i32>} : memref<2x256xf32, #tpu.memory_space<vmem>>, vector<1x256xf32>,
    %c1_i32 = arith.constant 1 : i32
    %65 = arith.cmpi eq, %arg2, %c1_i32 : i32
    %66 = arith.extui %65 : i1 to i32
    %c0_i32_39 = arith.constant 0 : i32
    %67 = arith.cmpi ne, %66, %c0_i32_39 : i32
    scf.if %67 {
      %c0_40 = arith.constant 0 : index
      %c0_41 = arith.constant 0 : index
      %68 = vector.load %arg15[%c0_40, %c0_41] : memref<2x256xf32, #tpu.memory_space<vmem>>, vector<1x256xf32>
      %cst_42 = arith.constant 1.000000e+00 : f32
      %69 = vector.broadcast %cst_42 : f32 to vector<1x256xf32>
      %70 = arith.divf %69, %68 : vector<1x256xf32>
      %c0_43 = arith.constant 0 : index
      %c0_44 = arith.constant 0 : index
      %71 = vector.load %arg13[%c0_43, %c0_44] : memref<32x256xf32, #tpu.memory_space<vmem>>, vector<16x256xf32>
      %72 = vector.broadcast %70 : vector<1x256xf32> to vector<16x256xf32>
      %73 = arith.mulf %71, %72 : vector<16x256xf32>
      %74 = arith.truncf %73 : vector<16x256xf32> to vector<16x256xbf16>
      %c0_45 = arith.constant 0 : index
      %c0_46 = arith.constant 0 : index
      %75 = vector.load %arg12[%c0_45, %c0_46] : memref<32x256xbf16, #tpu.memory_space<vmem>>, vector<16x256xbf16>
      tpu.vector_store %arg12[%c0_45, %c0_46], %74 {strides = array<i32>} : memref<32x256xbf16, #tpu.memory_space<vmem>>, vector<16x256xbf16>,
      %c1_47 = arith.constant 1 : index
      %c0_48 = arith.constant 0 : index
      %76 = vector.load %arg15[%c1_47, %c0_48] : memref<2x256xf32, #tpu.memory_space<vmem>>, vector<1x256xf32>
      %cst_49 = arith.constant 1.000000e+00 : f32
      %77 = vector.broadcast %cst_49 : f32 to vector<1x256xf32>
      %78 = arith.divf %77, %76 : vector<1x256xf32>
      %c16_50 = arith.constant 16 : index
      %c0_51 = arith.constant 0 : index
      %79 = vector.load %arg13[%c16_50, %c0_51] : memref<32x256xf32, #tpu.memory_space<vmem>>, vector<16x256xf32>
      %80 = vector.broadcast %78 : vector<1x256xf32> to vector<16x256xf32>
      %81 = arith.mulf %79, %80 : vector<16x256xf32>
      %82 = arith.truncf %81 : vector<16x256xf32> to vector<16x256xbf16>
      %c16_52 = arith.constant 16 : index
      %c0_53 = arith.constant 0 : index
      %83 = vector.load %arg12[%c16_52, %c0_53] : memref<32x256xbf16, #tpu.memory_space<vmem>>, vector<16x256xbf16>
      tpu.vector_store %arg12[%c16_52, %c0_53], %82 {strides = array<i32>} : memref<32x256xbf16, #tpu.memory_space<vmem>>, vector<16x256xbf16>,
      %c0_54 = arith.constant 0 : index
      %c0_55 = arith.constant 0 : index
      %84 = vector.load %arg7[%c0_54, %c0_55] : memref<4x32xbf16, #tpu.memory_space<vmem>>, vector<4x32xbf16>
      %c0_56 = arith.constant 0 : index
      %c0_57 = arith.constant 0 : index
      %85 = vector.load %arg12[%c0_56, %c0_57] : memref<32x256xbf16, #tpu.memory_space<vmem>>, vector<32x256xbf16>
      %cst_58 = arith.constant dense<0.000000e+00> : vector<4x256xf32>
      %86 = tpu.matmul %84, %85, %cst_58 {dimension_numbers = #tpu.dot_dimension_numbers<[1], [0], [0], [1], [0, 0, 1, 1], [], []>} : vector<4x32xbf16>, vector<32x256xbf16>, vector<4x256xf32> -> vector<4x256xf32>
      %c0_59 = arith.constant 0 : index
      %c0_60 = arith.constant 0 : index
      %87 = vector.load %arg8[%c0_59, %c0_60] : memref<4x1xf32, #tpu.memory_space<vmem>>, vector<4x1xf32>
      %88 = vector.broadcast %87 : vector<4x1xf32> to vector<4x256xf32>
      %89 = arith.addf %86, %88 : vector<4x256xf32>
      %cst_61 = arith.constant 0.000000e+00 : f32
      %90 = vector.broadcast %cst_61 : f32 to vector<4x256xf32>
      %91 = arith.maximumf %89, %90 : vector<4x256xf32>
      %c0_62 = arith.constant 0 : index
      %c0_63 = arith.constant 0 : index
      %c0_64 = arith.constant 0 : index
      %92 = vector.load %arg3[%c0_62, %c0_63, %c0_64] : memref<1x4x256xf32, #tpu.memory_space<vmem>>, vector<1x4x256xf32>
      %93 = vector.shape_cast %92 : vector<1x4x256xf32> to vector<4x256xf32>
      %94 = arith.addf %91, %93 : vector<4x256xf32>
      %95 = arith.truncf %94 : vector<4x256xf32> to vector<4x256xbf16>
      %c0_65 = arith.constant 0 : index
      %c0_66 = arith.constant 0 : index
      %c0_67 = arith.constant 0 : index
      %96 = vector.load %arg9[%c0_65, %c0_66, %c0_67] : memref<1x4x256xbf16, #tpu.memory_space<vmem>>, vector<1x4x256xbf16>
      %97 = vector.shape_cast %96 : vector<1x4x256xbf16> to vector<4x256xbf16>
      %98 = vector.shape_cast %95 : vector<4x256xbf16> to vector<1x4x256xbf16>
      tpu.vector_store %arg9[%c0_65, %c0_66, %c0_67], %98 {strides = array<i32>} : memref<1x4x256xbf16, #tpu.memory_space<vmem>>, vector<1x4x256xbf16>,
      %cst_68 = arith.constant dense<0.000000e+00> : vector<4xf32>
      %99 = vector.multi_reduction <add>, %94, %cst_68 [1] : vector<4x256xf32> to vector<4xf32>
      %100 = vector.shape_cast %99 : vector<4xf32> to vector<4x1xf32>
      %c0_69 = arith.constant 0 : index
      %c0_70 = arith.constant 0 : index
      %c0_71 = arith.constant 0 : index
      %c0_72 = arith.constant 0 : index
      %101 = vector.load %arg10[%c0_69, %c0_70, %c0_71, %c0_72] : memref<1x1x4x1xf32, #tpu.memory_space<vmem>>, vector<1x1x4x1xf32>
      %102 = vector.shape_cast %101 : vector<1x1x4x1xf32> to vector<4x1xf32>
      %103 = vector.shape_cast %100 : vector<4x1xf32> to vector<1x1x4x1xf32>
      tpu.vector_store %arg10[%c0_69, %c0_70, %c0_71, %c0_72], %103 {strides = array<i32>} : memref<1x1x4x1xf32, #tpu.memory_space<vmem>>, vector<1x1x4x1xf32>,
      %104 = arith.mulf %94, %94 : vector<4x256xf32>
      %cst_73 = arith.constant dense<0.000000e+00> : vector<4xf32>
      %105 = vector.multi_reduction <add>, %104, %cst_73 [1] : vector<4x256xf32> to vector<4xf32>
      %106 = vector.shape_cast %105 : vector<4xf32> to vector<4x1xf32>
      %c0_74 = arith.constant 0 : index
      %c0_75 = arith.constant 0 : index
      %c0_76 = arith.constant 0 : index
      %c0_77 = arith.constant 0 : index
      %107 = vector.load %arg11[%c0_74, %c0_75, %c0_76, %c0_77] : memref<1x1x4x1xf32, #tpu.memory_space<vmem>>, vector<1x1x4x1xf32>
      %108 = vector.shape_cast %107 : vector<1x1x4x1xf32> to vector<4x1xf32>
      %109 = vector.shape_cast %106 : vector<4x1xf32> to vector<1x1x4x1xf32>
      tpu.vector_store %arg11[%c0_74, %c0_75, %c0_76, %c0_77], %109 {strides = array<i32>} : memref<1x1x4x1xf32, #tpu.memory_space<vmem>>, vector<1x1x4x1xf32>,
    } else {
    }
    return
  }
  func.func @transform_0(%arg0: i32, %arg1: i32, %arg2: i32) -> (i32, i32, i32) {
    %c0_i32 = arith.constant 0 : i32
    %c0_i32_0 = arith.constant 0 : i32
    return %arg0, %c0_i32, %arg1 : i32, i32, i32
  }
  func.func @transform_1(%arg0: i32, %arg1: i32, %arg2: i32) -> (i32, i32, i32) {
    %c0_i32 = arith.constant 0 : i32
    %c0_i32_0 = arith.constant 0 : i32
    return %arg0, %c0_i32, %arg2 : i32, i32, i32
  }
  func.func @transform_2(%arg0: i32, %arg1: i32, %arg2: i32) -> (i32, i32) {
    %c0_i32 = arith.constant 0 : i32
    %c0_i32_0 = arith.constant 0 : i32
    %c0_i32_1 = arith.constant 0 : i32
    return %c0_i32, %c0_i32_0 : i32, i32
  }
  func.func @transform_3(%arg0: i32, %arg1: i32, %arg2: i32) -> (i32, i32) {
    %c0_i32 = arith.constant 0 : i32
    %c0_i32_0 = arith.constant 0 : i32
    %c0_i32_1 = arith.constant 0 : i32
    return %c0_i32, %c0_i32_0 : i32, i32
  }
  func.func @transform_4(%arg0: i32, %arg1: i32, %arg2: i32) -> (i32, i32) {
    %c0_i32 = arith.constant 0 : i32
    %c0_i32_0 = arith.constant 0 : i32
    %c0_i32_1 = arith.constant 0 : i32
    return %c0_i32, %c0_i32_0 : i32, i32
  }
  func.func @transform_5(%arg0: i32, %arg1: i32, %arg2: i32) -> (i32, i32) {
    %c0_i32 = arith.constant 0 : i32
    %c0_i32_0 = arith.constant 0 : i32
    %c0_i32_1 = arith.constant 0 : i32
    return %c0_i32, %c0_i32_0 : i32, i32
  }
  func.func @transform_6(%arg0: i32, %arg1: i32, %arg2: i32) -> (i32, i32, i32) {
    %c0_i32 = arith.constant 0 : i32
    %c0_i32_0 = arith.constant 0 : i32
    return %arg0, %c0_i32, %arg1 : i32, i32, i32
  }
  func.func @transform_7(%arg0: i32, %arg1: i32, %arg2: i32) -> (i32, i32, i32, i32) {
    %c0_i32 = arith.constant 0 : i32
    %c0_i32_0 = arith.constant 0 : i32
    %c0_i32_1 = arith.constant 0 : i32
    return %arg0, %arg1, %c0_i32, %c0_i32_0 : i32, i32, i32, i32
  }
  func.func @transform_8(%arg0: i32, %arg1: i32, %arg2: i32) -> (i32, i32, i32, i32) {
    %c0_i32 = arith.constant 0 : i32
    %c0_i32_0 = arith.constant 0 : i32
    %c0_i32_1 = arith.constant 0 : i32
    return %arg0, %arg1, %c0_i32, %c0_i32_0 : i32, i32, i32, i32
  }
}

</mosaic_0001>

<bundles_post_ra>
// kernel: non_local_layer.3
= control target key start
LH: loop header
LB: loop body
LE: loop exit
PB: predicated region body
PF: predicated region fallthrough
CT: control target
= control target key end

     0   :  { %s414_s12 = smov 0   ;;  %s416_s13 = smov 0   ;;  %s453_s0 = inlined_call_operand.vmem [shape: bf16[2,4,256], index: 0, kind: input, shape index: {}]   ;;  %s454_s1 = inlined_call_operand.vmem [shape: f32[4,1], index: 1, kind: input, shape index: {}]   ;;  %s455_s2 = inlined_call_operand.vmem [shape: f32[4,1], index: 2, kind: input, shape index: {}]   ;;  %s456_s3 = inlined_call_operand.vmem [shape: f32[2,4,256], index: 3, kind: output, shape index: {}]  }
   0x1   :  { %s418_s14 = smov 0  }
   0x2 LB: > { %s25_s15 = sadd.s32 1, %s386_s13  ;;  %p332_p0 = scmp.ge.s32.totalorder %s390_s14, 1  ;;  %s390_s14 = sphi %s418_s14, %s13_s14   ;;  %s386_s13 = sphi %s416_s13, %s458_s13   ;;  %s382_s12 = sphi %s414_s12, %s457_s12  }
   0x3   : > { %p27_p1 = scmp.ge.s32.totalorder %s25_s15, 2  ;;  %p158_p2 = scmp.lt.s32.totalorder %s390_s14, 3 }
   0x5   : > { %s460_s15 = smov (%p27_p1, %s25_s15), 0  ;;  %p159_p3 = pnand %p332_p0, %p158_p2 }
   0x6   : > { %v212_v0 = vld [vmem:[%s454_s1] sm:$0xf] (!%p159_p3)  ;;  %v392_v1 = vmov (!%p159_p3), 0   ;;  %p191_p4 = scmp.lt.s32.totalorder (!%p159_p3), %s382_s12, 1  ;;  %v393_v3 = vmov (!%p159_p3), 839922192   ;;  %v220_v5 = vlaneseq (!%p159_p3) }
   0x7   : > { %162 = sbr.rel (%p159_p3) target bundleno = 145 (0x91), region = 32  ;;  %367 = vset.pattern.permute.xlu0 (!%p159_p3), %v392_v1  ;;  %v226_v2 = vld [vmem:[%s455_s2] sm:$0xf] (!%p159_p3)  ;;  %v218_v4 = vunpack.c.l.s4 (!%p159_p3), %v393_v3 }
   0x8   : > { %215 = vperm.xlu0 (!%p159_p3), %367, %v212_v0   ;;  %v221_v7 = vshrl.u32 (!%p159_p3), %v220_v5, 7 }
   0x9   : > { %v219_v6 = vunpack.c.0.s8 (!%p159_p3), %v218_v4 }
   0xb   : > { %v222_v8 = vsub.s32 (!%p159_p3), %v219_v6, %v221_v7 }
   0xc   : > { %229 = vperm.xlu0 (!%p159_p3), %367, %v226_v2  }
   0xe   : > { %s462_s12 = smov (!%p191_p4, %s382_s12), 1 }
   0xf   : > { %s339_s20 = sshll.u32 %s462_s12, 2  ;;  %s340_s24 = sshll.u32 %s462_s12, 3 }
  0x10   : > { %s198_s23 = scalar_lea.vmem %s453_s0, %s339_s20  ;;  %s208_s27 = scalar_lea.vmem %s456_s3, %s340_s24 }
  0x11   : > { %v210_v9 = vld [vmem:[%s198_s23] sm:$0xf] }
  0x12   : > { %v211_v11 = vunpack.c.l.bf16 %v210_v9 }
  0x87   : > { %v216_v10 = vpop.permute.xlu0 %215 }
  0x88   : > { %v223_v12 = vrot.slane %v216_v10, %v222_v8 }
  0x8a   : > { %v225_v14 = vmul.f32 %v223_v12, %v211_v11 }
  0x8b   : > { %v230_v13 = vpop.permute.xlu0 %229 }
  0x8c   : > { %v237_v15 = vrot.slane %v230_v13, %v222_v8 }
  0x8e   : > { %v239_v16 = vadd.f32 %v237_v15, %v225_v14 }
  0x90   : > { %240 = vst [vmem:[%s208_s27] sm:$0xff] %v239_v16 }
  0x91 PF: > { %s13_s14 = sadd.s32 1, %s390_s14   ;;  %s457_s12 = smov %s386_s13 }
  0x92   : > { %p10_p5 = scmp.ge.s32.totalorder %s13_s14, 4   ;;  %s458_s13 = smov %s460_s15 }
  0x94   :  { %12 = sbr.rel (!%p10_p5) target bundleno = 2 (0x2), region = 62 }

// kernel: non_local_layer.2
= control target key start
LH: loop header
LB: loop body
LE: loop exit
PB: predicated region body
PF: predicated region fallthrough
CT: control target
= control target key end

     0   :  { %s2302_s27 = smov 0   ;;  %s2304_s28 = smov 0   ;;  %s2977_s0 = inlined_call_operand.vmem [shape: f32[2,4,256], index: 0, kind: input, shape index: {}]   ;;  %s2978_s1 = inlined_call_operand.vmem [shape: bf16[2,4,256], index: 1, kind: input, shape index: {}]   ;;  %s2979_s2 = inlined_call_operand.vmem [shape: bf16[32,4], index: 2, kind: input, shape index: {}]   ;;  %s2980_s3 = inlined_call_operand.vmem [shape: bf16[64,4], index: 3, kind: input, shape index: {}]   ;;  %s2981_s4 = inlined_call_operand.vmem [shape: bf16[4,32], index: 4, kind: input, shape index: {}]   ;;  %s2982_s5 = inlined_call_operand.vmem [shape: f32[4,1], index: 5, kind: input, shape index: {}]   ;;  %s2983_s6 = inlined_call_operand.vmem [shape: bf16[2,4,256], index: 6, kind: output, shape index: {0}]   ;;  %s2984_s7 = inlined_call_operand.vmem [shape: f32[2,1,4,1], index: 7, kind: output, shape index: {1}]   ;;  %s2985_s8 = inlined_call_operand.vmem [shape: f32[2,1,4,1], index: 8, kind: output, shape index: {2}]  }
   0x1   :  { %s2306_s29 = smov 0   ;;  %s2308_s30 = smov 0  }
   0x2   :  { %s2310_s9 = smov 0  }
   0x3 LB: > { %s31_s10 = sadd.s32 1, %s2241_s29  ;;  %s38_s11 = sadd.s32 1, %s2245_s30  ;;  %s2249_s9 = sphi %s2310_s9, %s19_s9   ;;  %s2245_s30 = sphi %s2308_s30, %s2993_s30   ;;  %s2241_s29 = sphi %s2306_s29, %s2992_s29   ;;  %s2237_s28 = sphi %s2304_s28, %s2991_s28   ;;  %s2233_s27 = sphi %s2302_s27, %s2990_s27  }
   0x4   : > { %p32_p0 = scmp.ge.s32.totalorder %s31_s10, 2  ;;  %p1955_p1 = scmp.ge.s32.totalorder %s2249_s9, 1 }
   0x5   : > { %p314_p2 = scmp.lt.s32.totalorder %s2249_s9, 5 }
   0x6   : > { %s2995_s10 = smov (%p32_p0, %s31_s10), 0  ;;  %s2997_s11 = smov (!%p32_p0, %s38_s11), %s2245_s30 }
   0x7   : > { %p315_p3 = pnand %p1955_p1, %p314_p2  ;;  %p40_p4 = scmp.ge.s32.totalorder %s2997_s11, 2 }
   0x8   : > { %p379_p5 = scmp.lt.s32.totalorder (!%p315_p3), %s2237_s28, 1  ;;  %p390_p6 = scmp.lt.s32.totalorder (!%p315_p3), %s2233_s27, 1 }
   0x9   : > { %s2999_s11 = smov (%p40_p4, %s2997_s11), 0  ;;  %318 = sbr.rel (%p315_p3) target bundleno = 1907 (0x773), region = 44 }
   0xa   : > { %2986 = sst [smem:[#allocation6_spill]] %s2999_s11  ;;  %p1964_p7 = scmp.ne.s32.totalorder (!%p315_p3), %s2233_s27, 0 }
  0x10   : > { %s3001_s28 = smov (!%p379_p5, %s2237_s28), 1  ;;  %424 = sbr.rel (%p1964_p7) target bundleno = 247 (0xf7), region = 48 }
  0x11   : > { %s391_s12 = scalar_select %p390_p6, %s2233_s27, 1 }
  0x12   : > { %s2000_s13 = sshll.u32 %s3001_s28, 3  ;;  %s1958_s14 = sshll.u32 %s3001_s28, 1  ;;  %vm452_vm0 = vcmask (!%p1964_p7), 1041408   ;;  %v2251_v3 = vmov (!%p1964_p7), 0   ;;  %v2067_v6 = vld [vmem:[%s2979_s2] sm:$0xff] (!%p1964_p7)   ;;  %v2068_v7 = vld [vmem:[%s2979_s2 + $0x8] sm:$0xff] (!%p1964_p7)  }
  0x13   : > { %s2339_s17 = scalar_lea.vmem %s2977_s0, %s2000_s13  ;;  %s393_s18 = sadd.s32 %s1958_s14, %s391_s12  ;;  %491 = vmatprep.mubr.bf16.mxu0 (!%p1964_p7), %v2251_v3  ;;  %501 = vmatprep.mubr.bf16.mxu1 (!%p1964_p7), %v2251_v3  ;;  %vm445_vm1 = vcmask (!%p1964_p7), 31744   ;;  %v2252_v8 = vmov (!%p1964_p7), -1e+30   ;;  %v2253_v9 = vmov (!%p1964_p7), 0.0  }
  0x14   : > { %s1959_s19 = sshll.u32 %s393_s18, 1  ;;  %s2341_s20 = sshll.u32 %s3001_s28, 2  ;;  %v425_v0 = vld [vmem:[%s2339_s17] sm:$0xff] (!%p1964_p7)  ;;  %520 = vst [vmem:[#allocation4] sm:$0xf] (!%p1964_p7), %v2252_v8  ;;  %522 = vst [vmem:[#allocation3] sm:$0xff] (!%p1964_p7), %v2253_v9 }
  0x15   : > { %s2346_s23 = scalar_lea.vmem %s2978_s1, %s1959_s19  ;;  %s404_s26 = scalar_lea.vmem %s2983_s6, %s2341_s20  ;;  %v427_v1 = vcombine.high (!%p1964_p7), %v425_v0, %v425_v0  ;;  %v429_v2 = vpack.c.bf16 (!%p1964_p7), %v425_v0, %v425_v0  ;;  %521 = vst [vmem:[#allocation5] sm:$0xf] (!%p1964_p7), %v2253_v9  ;;  %523 = vst [vmem:[#allocation3 + $0x8] sm:$0xff] (!%p1964_p7), %v2253_v9 }
  0x16   : > { %s412_s13 = scalar_lea.vmem %s2984_s7, %s2341_s20  ;;  %s419_s28 = scalar_lea.vmem %s2985_s8, %s2341_s20  ;;  %524 = vst [vmem:[#allocation3 + $0x10] sm:$0xff] (!%p1964_p7), %v2253_v9  ;;  %525 = vst [vmem:[#allocation3 + $0x18] sm:$0xff] (!%p1964_p7), %v2253_v9 }
  0x17   : > { %v430_v4 = vpack.c.bf16 %v427_v1, %v427_v1  ;;  %v454_v5 = vsel %vm452_vm0, %v429_v2, 0  ;;  %526 = vst [vmem:[#allocation3 + $0x20] sm:$0xff] %v2253_v9  ;;  %527 = vst [vmem:[#allocation3 + $0x28] sm:$0xff] %v2253_v9 }
  0x18   : > { %528 = vst [vmem:[#allocation3 + $0x30] sm:$0xff] %v2253_v9  ;;  %529 = vst [vmem:[#allocation3 + $0x38] sm:$0xff] %v2253_v9 }
  0x19   : > { %1967 = vmatprep.subr.msk.bf16.mxu0 %vm452_vm0, %v430_v4  ;;  %2017 = vmatprep.subr.msk.bf16.mxu1 %vm452_vm0, %v430_v4 }
  0x1a   : > { %460 = vmatpush1.bf16.msra.mxu0 %v454_v5  ;;  %2018 = vmatpush1.bf16.msra.mxu1 %v454_v5 }
  0x1d   : > { %1968 = vmatmul.mubr.msk.bf16.vlgmr.msra.gmra.mrb[0].mxu0 %vm445_vm1, %v2067_v6  ;;  %1969 = vmatmul.mubr.msk.bf16.vlgmr.msra.gmra.mrb[0].mxu1 %vm445_vm1, %v2068_v7 }
  0xf0   : > { %v493_v10 = vpop.f32.mrb[0].mxu0  ;;  %v503_v11 = vpop.f32.mrb[0].mxu1 }
  0xf1   : > { %v495_v12 = vpop.f32.mrb[1].mxu0  ;;  %v505_v13 = vpop.f32.mrb[1].mxu1 }
  0xf2   : > { %v497_v14 = vpop.f32.mrb[2].mxu0  ;;  %v507_v15 = vpop.f32.mrb[2].mxu1 }
  0xf3   : > { %v512_v16 = vpack.c.bf16 %v497_v14, %v493_v10  ;;  %v514_v17 = vpack.c.bf16 %v507_v15, %v503_v11  ;;  %v499_v18 = vpop.f32.mrb[3].mxu0  ;;  %v509_v19 = vpop.f32.mrb[3].mxu1 }
  0xf4   : > { %v513_v20 = vpack.c.bf16 %v499_v18, %v495_v12  ;;  %v515_v21 = vpack.c.bf16 %v509_v19, %v505_v13 }
  0xf5   : > { %516 = vst [vmem:[#allocation2] sm:$0xff] %v512_v16  ;;  %518 = vst [vmem:[#allocation2 + $0x10] sm:$0xff] %v514_v17 }
  0xf6   : > { %517 = vst [vmem:[#allocation2 + $0x8] sm:$0xff] %v513_v20  ;;  %519 = vst [vmem:[#allocation2 + $0x18] sm:$0xff] %v515_v21 }
  0xf7 PF: > { %v530_v22 = vld [vmem:[%s2346_s23] sm:$0x3]  ;;  %vm572_vm2 = vcmask 1041408   ;;  %vm559_vm3 = vcmask 31744   ;;  %v2070_v25 = vld [vmem:[%s2980_s3 + $0x8] sm:$0xff]   ;;  %v2071_v26 = vld [vmem:[%s2980_s3 + $0x10] sm:$0xff]  }
  0xf8   : > { %v2069_v23 = vld [vmem:[%s2980_s3] sm:$0xff]   ;;  %2019 = vmatprep.subr.msk.bf16.mxu1 %vm572_vm2, %v530_v22  ;;  %v574_v24 = vsel %vm572_vm2, %v530_v22, 0  ;;  %v2072_v27 = vld [vmem:[%s2980_s3 + $0x18] sm:$0xff]   ;;  %v2254_v30 = vmov 0   ;;  %vm663_vm4 = vcmask 130048   ;;  %p1994_p8 = scmp.ne.s32.totalorder %s2233_s27, 1 }
  0xf9   : > { %2008 = vmatpush3.bf16.msra.mxu1 %v574_v24  ;;  %2009 = vmatprep.mubr.msk.bf16.mxu1 %vm559_vm3, %v2069_v23  ;;  %vm1675_vm6 = vcmask (!%p1994_p8), 261120   ;;  %vm1742_vm7 = vcmask (!%p1994_p8), 1043456   ;;  %vm1748_vm8 = vcmask (!%p1994_p8), 3072  }
  0xfa   : > { %1089 = vmatprep.mubr.bf16.mxu0 %v2254_v30 }
  0xfc   : > { %2010 = vmatmul.mubr.msk.bf16.vlgmr.msra.gmra.mrb[0].mxu1 %vm559_vm3, %v2070_v25  ;;  %v645_v29 = vld [vmem:[#allocation2] sm:$0xff] }
  0xfd   : > { %v646_v28 = vld [vmem:[#allocation2 + $0x8] sm:$0xff]  ;;  %2013 = vmatprep.mubr.msk.bf16.mxu1 %vm559_vm3, %v2071_v26 }
  0xfe   : > { %688 = vmatprep.subr.bf16.mxu1 %v646_v28 }
  0xff   : > { %689 = vmatpush1.bf16.msra.mxu1 %v645_v29 }
 0x104   : > { %2014 = vmatmul.mubr.msk.bf16.gmra.mrb[4].mxu1 %vm559_vm3, %v2072_v27 }
 0x105   : > { %720 = vmatprep.mubr.bf16.mxu1 %v2254_v30 }
 0x1cf   : > { %v2011_v31 = vpop.f32.mrb[0].mxu1 }
 0x1d0   : > { %v610_v32 = vpop.f32.mrb[1].mxu1 }
 0x1d1   : > { %v2012_v33 = vpop.f32.mrb[2].mxu1 }
 0x1d2   : > { %v642_v34 = vpack.c.bf16 %v2012_v33, %v2011_v31  ;;  %v613_v35 = vpop.f32.mrb[3].mxu1 }
 0x1d3   : > { %v641_v36 = vpack.c.bf16 %v613_v35, %v610_v32 }
 0x1d5   : > { %647 = vxpose.xlu0.c.b16.start.end [1/1] (short) %v641_v36, 128 }
 0x1d7   : > { %v2387_v39 = vpop.f32.mrb[4].mxu1 }
 0x1d8   : > { %v2389_v41 = vpop.f32.mrb[5].mxu1 }
 0x1d9   : > { %v2391_v42 = vpop.f32.mrb[6].mxu1 }
 0x1da   : > { %v644_v43 = vpack.c.bf16 %v2391_v42, %v2387_v39  ;;  %v2395_v44 = vpop.f32.mrb[7].mxu1  ;;  %v1580_v42 = vld [vmem:[#allocation3 + $0x20] sm:$0xff] }
 0x1db   : > { %v643_v45 = vpack.c.bf16 %v2395_v44, %v2389_v41 }
 0x1f2   : > { %1130 = vxpose.xlu0.c.b16.start.end [1/1] (short) %v642_v34, 128 }
 0x23b   : > { %v655_v37 = vpop.trf.xlu0 }
 0x23c   : > { %1978 = vmatmul.mubr.msk.bf16.vlgmr.msra.gmra.mrb[8].mxu1 %vm663_vm4, %v655_v37 }
 0x23d   : > { %730 = vmatprep.mubr.bf16.mxu1 %v2254_v30 }
 0x23f   : > { %v656_v38 = vpop.trf.xlu0 }
 0x243   : > { %v657_v40 = vpop.trf.xlu0 }
 0x244   : > { %1979 = vmatmul.mubr.msk.bf16.gmra.mrb[12].mxu1 %vm663_vm4, %v656_v38 }
 0x245   : > { %740 = vmatprep.mubr.bf16.mxu1 %v2254_v30 }
 0x247   : > { %v658_v46 = vpop.trf.xlu0 }
 0x24b   : > { %v659_v47 = vpop.trf.xlu0 }
 0x24c   : > { %1980 = vmatmul.mubr.msk.bf16.gmra.mrb[16].mxu1 %vm663_vm4, %v657_v40 }
 0x24d   : > { %750 = vmatprep.mubr.bf16.mxu1 %v2254_v30 }
 0x24f   : > { %v660_v48 = vpop.trf.xlu0 }
 0x253   : > { %v661_v49 = vpop.trf.xlu0 }
 0x254   : > { %1981 = vmatmul.mubr.msk.bf16.gmra.mrb[20].mxu1 %vm663_vm4, %v658_v46 }
 0x255   : > { %760 = vmatprep.mubr.bf16.mxu1 %v2254_v30 }
 0x257   : > { %v662_v50 = vpop.trf.xlu0 }
 0x25c   : > { %1982 = vmatmul.mubr.msk.bf16.gmra.mrb[24].mxu1 %vm663_vm4, %v659_v47 }
 0x25d   : > { %770 = vmatprep.mubr.bf16.mxu1 %v2254_v30 }
 0x264   : > { %1983 = vmatmul.mubr.msk.bf16.gmra.mrb[28].mxu1 %vm663_vm4, %v660_v48 }
 0x265   : > { %780 = vmatprep.mubr.bf16.mxu1 %v2254_v30 }
 0x26c   : > { %1984 = vmatmul.mubr.msk.bf16.gmra.mrb[32].mxu1 %vm663_vm4, %v661_v49 }
 0x26d   : > { %790 = vmatprep.mubr.bf16.mxu1 %v2254_v30 }
 0x274   : > { %1985 = vmatmul.mubr.msk.bf16.gmra.mrb[36].mxu1 %vm663_vm4, %v662_v50 }
 0x275   : > { %1569 = vmatprep.mubr.bf16.mxu1 %v2254_v30 }
 0x30f   : > { %v2411_v51 = vpop.f32.mrb[8].mxu1 }
 0x310   : > { %v2413_v52 = vpop.f32.mrb[9].mxu1 }
 0x311   : > { %v2415_v53 = vpop.f32.mrb[10].mxu1 }
 0x312   : > { %v2417_v54 = vpop.f32.mrb[11].mxu1 }
 0x317   : > { %v2419_v55 = vpop.f32.mrb[12].mxu1 }
 0x318   : > { %v803_v56 = vmax.f32 %v2411_v51, %v2419_v55  ;;  %v2423_v57 = vpop.f32.mrb[13].mxu1 }
 0x319   : > { %v824_v58 = vmax.f32 %v2413_v52, %v2423_v57  ;;  %v2427_v59 = vpop.f32.mrb[14].mxu1 }
 0x31a   : > { %v804_v60 = vmax.f32 %v2415_v53, %v2427_v59  ;;  %v2431_v61 = vpop.f32.mrb[15].mxu1 }
 0x31b   : > { %v825_v62 = vmax.f32 %v2417_v54, %v2431_v61 }
 0x31f   : > { %v2435_v63 = vpop.f32.mrb[16].mxu1 }
 0x320   : > { %v805_v0 = vmax.f32 %v803_v56, %v2435_v63  ;;  %v2438_v1 = vpop.f32.mrb[17].mxu1 }
 0x321   : > { %v826_v2 = vmax.f32 %v824_v58, %v2438_v1  ;;  %v2441_v3 = vpop.f32.mrb[18].mxu1 }
 0x322   : > { %v806_v4 = vmax.f32 %v804_v60, %v2441_v3  ;;  %v2444_v5 = vpop.f32.mrb[19].mxu1 }
 0x323   : > { %v827_v6 = vmax.f32 %v825_v62, %v2444_v5 }
 0x327   : > { %v2447_v7 = vpop.f32.mrb[20].mxu1 }
 0x328   : > { %v807_v8 = vmax.f32 %v805_v0, %v2447_v7  ;;  %v2450_v9 = vpop.f32.mrb[21].mxu1 }
 0x329   : > { %v828_v10 = vmax.f32 %v826_v2, %v2450_v9  ;;  %v2453_v11 = vpop.f32.mrb[22].mxu1 }
 0x32a   : > { %v808_v12 = vmax.f32 %v806_v4, %v2453_v11  ;;  %v2456_v13 = vpop.f32.mrb[23].mxu1 }
 0x32b   : > { %v829_v14 = vmax.f32 %v827_v6, %v2456_v13 }
 0x32f   : > { %v2459_v15 = vpop.f32.mrb[24].mxu1 }
 0x330   : > { %v809_v16 = vmax.f32 %v807_v8, %v2459_v15  ;;  %v2462_v17 = vpop.f32.mrb[25].mxu1 }
 0x331   : > { %v830_v18 = vmax.f32 %v828_v10, %v2462_v17  ;;  %v2465_v19 = vpop.f32.mrb[26].mxu1  ;;  %v2255_v10 = vmov 1966171168  }
 0x332   : > { %v810_v20 = vmax.f32 %v808_v12, %v2465_v19  ;;  %v2468_v21 = vpop.f32.mrb[27].mxu1  ;;  %v849_v12 = vunpack.c.l.s4 %v2255_v10 }
 0x333   : > { %v831_v22 = vmax.f32 %v829_v14, %v2468_v21  ;;  %v851_v14 = vlaneseq }
 0x335   : > { %vm2512_vm5 = vcmp.lt.s32.totalorder %v851_v14, 256 }
 0x337   : > { %v2471_v23 = vpop.f32.mrb[28].mxu1 }
 0x338   : > { %v811_v24 = vmax.f32 %v809_v16, %v2471_v23  ;;  %v2474_v25 = vpop.f32.mrb[29].mxu1 }
 0x339   : > { %v832_v26 = vmax.f32 %v830_v18, %v2474_v25  ;;  %v2477_v27 = vpop.f32.mrb[30].mxu1 }
 0x33a   : > { %v812_v28 = vmax.f32 %v810_v20, %v2477_v27  ;;  %v2480_v29 = vpop.f32.mrb[31].mxu1 }
 0x33b   : > { %v833_v31 = vmax.f32 %v831_v22, %v2480_v29 }
 0x33f   : > { %v2483_v32 = vpop.f32.mrb[32].mxu1 }
 0x340   : > { %v813_v33 = vmax.f32 %v811_v24, %v2483_v32  ;;  %v2486_v34 = vpop.f32.mrb[33].mxu1  ;;  %v850_v24 = vunpack.c.0.s8 %v849_v12 }
 0x341   : > { %v834_v35 = vmax.f32 %v832_v26, %v2486_v34  ;;  %v2489_v36 = vpop.f32.mrb[34].mxu1  ;;  %v852_v26 = vshrl.u32 %v851_v14, 7 }
 0x342   : > { %v814_v37 = vmax.f32 %v812_v28, %v2489_v36  ;;  %v2492_v38 = vpop.f32.mrb[35].mxu1 }
 0x343   : > { %v835_v40 = vmax.f32 %v833_v31, %v2492_v38 }
 0x347   : > { %v2495_v46 = vpop.f32.mrb[36].mxu1 }
 0x348   : > { %v815_v47 = vmax.f32 %v813_v33, %v2495_v46  ;;  %v2498_v48 = vpop.f32.mrb[37].mxu1 }
 0x349   : > { %v836_v49 = vmax.f32 %v834_v35, %v2498_v48  ;;  %v2501_v50 = vpop.f32.mrb[38].mxu1 }
 0x34a   : > { %v816_v56 = vmax.f32 %v814_v37, %v2501_v50  ;;  %v798_v58 = vpop.f32.mrb[39].mxu1  ;;  %v2504_v37 = vsub.s32 %v850_v24, %v852_v26 }
 0x34b   : > { %v837_v60 = vmax.f32 %v835_v40, %v798_v58 }
 0x34c   : > { %v817_v62 = vmax.f32 %v815_v47, %v816_v56 }
 0x34d   : > { %v838_v0 = vmax.f32 %v836_v49, %v837_v60  ;;  %v2507_v49 = vld [vmem:[#allocation4] ss:$2 sm:$0x3]  ;;  %v2510_v60 = vsub.s32 1, %v852_v26 }
 0x34e   : > { %v818_v2 = vrot.slane %v817_v62, 4 }
 0x34f   : > { %v839_v4 = vrot.slane %v838_v0, 4 }
 0x350   : > { %v819_v6 = vmax.f32 %v817_v62, %v818_v2  ;;  %v2519_v2 = vsub.s32 0, %v852_v26 }
 0x351   : > { %v840_v8 = vmax.f32 %v838_v0, %v839_v4 }
 0x352   : > { %v820_v16 = vrot.slane %v819_v6, 2 }
 0x353   : > { %v841_v18 = vrot.slane %v840_v8, 2 }
 0x354   : > { %v821_v20 = vmax.f32 %v819_v6, %v820_v16 }
 0x355   : > { %v842_v22 = vmax.f32 %v840_v8, %v841_v18 }
 0x356   : > { %v822_v28 = vrot.slane %v821_v20, 1 }
 0x357   : > { %v843_v31 = vrot.slane %v842_v22, 1 }
 0x358   : > { %v823_v33 = vmax.f32 %v821_v20, %v822_v28 }
 0x359   : > { %v844_v35 = vmax.f32 %v842_v22, %v843_v31 }
 0x35b   : > { %v847_v40 = vcombine.low %v823_v33, %v844_v35 }
 0x35d   : > { %v854_v47 = vrot.slane %v847_v40, %v2504_v37 }
 0x35f   : > { %v861_v56 = vrot.slane %v854_v47, %v2504_v37 }
 0x361   : > { %v2517_v0 = vmax.f32 %v2507_v49, %v861_v56 }
 0x363   : > { %v864_v4 = vsub.f32 %v2507_v49, %v2517_v0  ;;  %v875_v6 = vrot.slane %v2517_v0, %v2510_v60  ;;  %1127 = vst.msk [vmem:[#allocation4] ss:$2 sm:$0x3] %vm2512_vm5, %v2517_v0  ;;  %v2530_v8 = vrot.slane %v2517_v0, %v2519_v2  ;;  %v1138_v0 = vpop.trf.xlu0 }
 0x365   : > { %v909_v10 = vsub.f32 %v798_v58, %v875_v6  ;;  %v879_v12 = vsub.f32 %v2413_v52, %v875_v6  ;;  %v881_v14 = vsub.f32 %v2417_v54, %v875_v6  ;;  %v883_v16 = vsub.f32 %v2423_v57, %v875_v6 }
 0x366   : > { %v885_v18 = vsub.f32 %v2431_v61, %v875_v6  ;;  %v887_v20 = vsub.f32 %v2438_v1, %v875_v6  ;;  %v889_v22 = vsub.f32 %v2444_v5, %v875_v6  ;;  %v891_v26 = vsub.f32 %v2450_v9, %v875_v6 }
 0x367   : > { %v972_v24 = vmul.f32 1.442695, %v909_v10  ;;  %v893_v28 = vsub.f32 %v2456_v13, %v875_v6  ;;  %v895_v31 = vsub.f32 %v2462_v17, %v875_v6  ;;  %v897_v58 = vsub.f32 %v2468_v21, %v875_v6 }
 0x368   : > { %v899_v52 = vsub.f32 %v2474_v25, %v875_v6  ;;  %v901_v54 = vsub.f32 %v2480_v29, %v875_v6  ;;  %v903_v57 = vsub.f32 %v2486_v34, %v875_v6  ;;  %v905_v61 = vsub.f32 %v2492_v38, %v875_v6 }
 0x369   : > { %v907_v1 = vsub.f32 %v2498_v48, %v875_v6  ;;  %v912_v5 = vmul.f32 1.442695, %v879_v12  ;;  %v916_v33 = vmul.f32 1.442695, %v881_v14  ;;  %v920_v35 = vmul.f32 1.442695, %v883_v16 }
 0x36a   : > { %v878_v9 = vsub.f32 %v2411_v51, %v2530_v8  ;;  %2073 = vpow2.f32 %v972_v24  ;;  %v924_v13 = vmul.f32 1.442695, %v885_v18  ;;  %v880_v17 = vsub.f32 %v2415_v53, %v2530_v8 }
 0x36b   : > { %2075 = vpow2.f32 %v912_v5  ;;  %v928_v21 = vmul.f32 1.442695, %v887_v20  ;;  %v932_v25 = vmul.f32 1.442695, %v889_v22  ;;  %v936_v29 = vmul.f32 1.442695, %v891_v26 }
 0x36c   : > { %2077 = vpow2.f32 %v916_v33  ;;  %v940_v34 = vmul.f32 1.442695, %v893_v28  ;;  %v944_v38 = vmul.f32 1.442695, %v895_v31  ;;  %v882_v48 = vsub.f32 %v2419_v55, %v2530_v8 }
 0x36d   : > { %2079 = vpow2.f32 %v920_v35  ;;  %v884_v51 = vsub.f32 %v2427_v59, %v2530_v8  ;;  %v886_v40 = vsub.f32 %v2435_v63, %v2530_v8  ;;  %v888_v53 = vsub.f32 %v2441_v3, %v2530_v8 }
 0x36e   : > { %2081 = vpow2.f32 %v924_v13  ;;  %v948_v47 = vmul.f32 1.442695, %v897_v58  ;;  %v890_v56 = vsub.f32 %v2447_v7, %v2530_v8  ;;  %v892_v6 = vsub.f32 %v2453_v11, %v2530_v8 }
 0x36f   : > { %2083 = vpow2.f32 %v928_v21  ;;  %v952_v55 = vmul.f32 1.442695, %v899_v52  ;;  %v956_v10 = vmul.f32 1.442695, %v901_v54  ;;  %v960_v12 = vmul.f32 1.442695, %v903_v57 }
 0x370   : > { %2085 = vpow2.f32 %v932_v25  ;;  %v894_v59 = vsub.f32 %v2459_v15, %v2530_v8  ;;  %v896_v63 = vsub.f32 %v2465_v19, %v2530_v8  ;;  %v898_v3 = vsub.f32 %v2471_v23, %v2530_v8 }
 0x371   : > { %2087 = vpow2.f32 %v936_v29  ;;  %v900_v7 = vsub.f32 %v2477_v27, %v2530_v8  ;;  %v964_v11 = vmul.f32 1.442695, %v905_v61  ;;  %v902_v16 = vsub.f32 %v2483_v32, %v2530_v8 }
 0x372   : > { %2089 = vpow2.f32 %v940_v34  ;;  %v904_v15 = vsub.f32 %v2489_v36, %v2530_v8  ;;  %v968_v20 = vmul.f32 1.442695, %v907_v1  ;;  %v910_v22 = vmul.f32 1.442695, %v878_v9 }
 0x373   : > { %2091 = vpow2.f32 %v944_v38  ;;  %v914_v23 = vmul.f32 1.442695, %v880_v17  ;;  %v906_v27 = vsub.f32 %v2495_v46, %v2530_v8  ;;  %v908_v32 = vsub.f32 %v2501_v50, %v2530_v8 }
 0x374   : > { %v2571_v14 = vpop.eup %2073  ;;  %2093 = vpow2.f32 %v948_v47  ;;  %v918_v36 = vmul.f32 1.442695, %v882_v48  ;;  %v922_v54 = vmul.f32 1.442695, %v884_v51  ;;  %v926_v61 = vmul.f32 1.442695, %v886_v40 }
 0x375   : > { %v2076_v18 = vpop.eup %2075  ;;  %2095 = vpow2.f32 %v952_v55  ;;  %v930_v5 = vmul.f32 1.442695, %v888_v53  ;;  %v934_v35 = vmul.f32 1.442695, %v890_v56  ;;  %v938_v21 = vmul.f32 1.442695, %v892_v6 }
 0x376   : > { %v2078_v19 = vpop.eup %2077  ;;  %2097 = vpow2.f32 %v956_v10  ;;  %v942_v29 = vmul.f32 1.442695, %v894_v59  ;;  %v946_v51 = vmul.f32 1.442695, %v896_v63  ;;  %v950_v53 = vmul.f32 1.442695, %v898_v3 }
 0x377   : > { %v2579_v24 = vpop.eup %2079  ;;  %2099 = vpow2.f32 %v960_v12  ;;  %v996_v26 = vadd.f32 %v2078_v19, %v2076_v18  ;;  %v1042_v28 = vpack.c.bf16 %v2078_v19, %v2076_v18  ;;  %v954_v55 = vmul.f32 1.442695, %v900_v7 }
 0x378   : > { %v2583_v31 = vpop.eup %2081  ;;  %2101 = vpow2.f32 %v964_v11  ;;  %v958_v12 = vmul.f32 1.442695, %v902_v16  ;;  %v962_v11 = vmul.f32 1.442695, %v904_v15  ;;  %v966_v19 = vmul.f32 1.442695, %v906_v27 }
 0x379   : > { %v2585_v58 = vpop.eup %2083  ;;  %2103 = vpow2.f32 %v968_v20  ;;  %v997_v52 = vadd.f32 %v2579_v24, %v996_v26  ;;  %1057 = vmatprep.subr.bf16.mxu0 %v1042_v28  ;;  %v1044_v46 = vpack.c.bf16 %v2583_v31, %v2579_v24  ;;  %v970_v16 = vmul.f32 1.442695, %v908_v32 }
 0x37a   : > { %v2590_v57 = vpop.eup %2085  ;;  %2105 = vpow2.f32 %v910_v22 }
 0x37b   : > { %v2592_v1 = vpop.eup %2087  ;;  %v998_v50 = vadd.f32 %v2583_v31, %v997_v52  ;;  %2107 = vpow2.f32 %v914_v23  ;;  %v1046_v8 = vpack.c.bf16 %v2590_v57, %v2585_v58 }
 0x37c   : > { %v2597_v33 = vpop.eup %2089  ;;  %2109 = vpow2.f32 %v918_v36 }
 0x37d   : > { %v2599_v9 = vpop.eup %2091  ;;  %v999_v13 = vadd.f32 %v2585_v58, %v998_v50  ;;  %2111 = vpow2.f32 %v922_v54  ;;  %v1048_v17 = vpack.c.bf16 %v2597_v33, %v2592_v1 }
 0x37e   : > { %v2604_v25 = vpop.eup %2093  ;;  %2113 = vpow2.f32 %v926_v61 }
 0x37f   : > { %v2606_v34 = vpop.eup %2095  ;;  %v1000_v38 = vadd.f32 %v2590_v57, %v999_v13  ;;  %2115 = vpow2.f32 %v930_v5  ;;  %v1050_v48 = vpack.c.bf16 %v2604_v25, %v2599_v9 }
 0x380   : > { %v2611_v40 = vpop.eup %2097  ;;  %2117 = vpow2.f32 %v934_v35 }
 0x381   : > { %v2613_v47 = vpop.eup %2099  ;;  %v1001_v56 = vadd.f32 %v2592_v1, %v1000_v38  ;;  %2119 = vpow2.f32 %v938_v21  ;;  %v1052_v6 = vpack.c.bf16 %v2611_v40, %v2606_v34 }
 0x382   : > { %v2618_v10 = vpop.eup %2101  ;;  %2121 = vpow2.f32 %v942_v29 }
 0x383   : > { %v2620_v59 = vpop.eup %2103  ;;  %v1002_v63 = vadd.f32 %v2597_v33, %v1001_v56  ;;  %2123 = vpow2.f32 %v946_v51  ;;  %v1054_v3 = vpack.c.bf16 %v2618_v10, %v2613_v47 }
 0x384   : > { %v2106_v18 = vpop.eup %2105  ;;  %2125 = vpow2.f32 %v950_v53  ;;  %v1056_v20 = vpack.c.bf16 %v2571_v14, %v2620_v59 }
 0x385   : > { %v2108_v7 = vpop.eup %2107  ;;  %v1003_v22 = vadd.f32 %v2599_v9, %v1002_v63  ;;  %2127 = vpow2.f32 %v954_v55 }
 0x386   : > { %v2110_v23 = vpop.eup %2109  ;;  %v975_v26 = vadd.f32 %v2108_v7, %v2106_v18  ;;  %v1041_v28 = vpack.c.bf16 %v2108_v7, %v2106_v18  ;;  %2129 = vpow2.f32 %v958_v12 }
 0x387   : > { %v2112_v36 = vpop.eup %2111  ;;  %v1004_v52 = vadd.f32 %v2604_v25, %v1003_v22  ;;  %2131 = vpow2.f32 %v962_v11 }
 0x388   : > { %v2114_v15 = vpop.eup %2113  ;;  %1058 = vmatpush1.bf16.msra.mxu0 %v1041_v28  ;;  %v976_v54 = vadd.f32 %v2110_v23, %v975_v26  ;;  %v1043_v61 = vpack.c.bf16 %v2112_v36, %v2110_v23  ;;  %2133 = vpow2.f32 %v966_v19 }
 0x389   : > { %v2116_v50 = vpop.eup %2115  ;;  %v1005_v27 = vadd.f32 %v2606_v34, %v1004_v52  ;;  %1059 = vmatprep.subr.bf16.mxu0 %v1044_v46  ;;  %2135 = vpow2.f32 %v970_v16  ;;  %v865_v34 = vmul.f32 1.442695, %v864_v4 }
 0x38a   : > { %v2118_v32 = vpop.eup %2117  ;;  %v977_v5 = vadd.f32 %v2112_v36, %v976_v54  ;;  %v1045_v35 = vpack.c.bf16 %v2116_v50, %v2114_v15 }
 0x38b   : > { %v2120_v13 = vpop.eup %2119  ;;  %v1006_v21 = vadd.f32 %v2611_v40, %v1005_v27  ;;  %2137 = vpow2.f32 %v865_v34  ;;  %v802_v27 = vld [vmem:[#allocation5] ss:$2 sm:$0x3] }
 0x38c   : > { %v2122_v29 = vpop.eup %2121  ;;  %1060 = vmatpush1.bf16.msra.mxu0 %v1043_v61  ;;  %v978_v38 = vadd.f32 %v2114_v15, %v977_v5  ;;  %v1047_v51 = vpack.c.bf16 %v2120_v13, %v2118_v32 }
 0x38d   : > { %v2124_v53 = vpop.eup %2123  ;;  %v1007_v56 = vadd.f32 %v2613_v47, %v1006_v21  ;;  %1061 = vmatprep.subr.bf16.mxu0 %v1046_v8  ;;  %v1128_v47 = vld [vmem:[#allocation2 + $0x10] sm:$0xff] }
 0x38e   : > { %v2126_v24 = vpop.eup %2125  ;;  %v979_v31 = vadd.f32 %v2116_v50, %v978_v38  ;;  %v1049_v46 = vpack.c.bf16 %v2124_v53, %v2122_v29 }
 0x38f   : > { %v2128_v55 = vpop.eup %2127  ;;  %v1008_v12 = vadd.f32 %v2618_v10, %v1007_v56  ;;  %v1100_v56 = vld [vmem:[#allocation3] sm:$0xff] }
 0x390   : > { %v2130_v63 = vpop.eup %2129  ;;  %1062 = vmatpush1.bf16.msra.mxu0 %v1045_v35  ;;  %v980_v11 = vadd.f32 %v2118_v32, %v979_v31  ;;  %v1051_v18 = vpack.c.bf16 %v2128_v55, %v2126_v24  ;;  %v1139_v32 = vpop.trf.xlu0  ;;  %v1101_v31 = vld [vmem:[#allocation3 + $0x8] sm:$0xff] }
 0x391   : > { %v2132_v19 = vpop.eup %2131  ;;  %v1009_v7 = vadd.f32 %v2620_v59, %v1008_v12  ;;  %1063 = vmatprep.subr.bf16.mxu0 %v1048_v17  ;;  %v1103_v12 = vld [vmem:[#allocation3 + $0x18] sm:$0xff] }
 0x392   : > { %v2134_v22 = vpop.eup %2133  ;;  %v981_v58 = vadd.f32 %v2120_v13, %v980_v11  ;;  %v1053_v57 = vpack.c.bf16 %v2132_v19, %v2130_v63 }
 0x393   : > { %v2136_v8 = vpop.eup %2135  ;;  %v1010_v16 = vadd.f32 %v2571_v14, %v1009_v7 }
 0x394   : > { %1064 = vmatpush1.bf16.msra.mxu0 %v1047_v51  ;;  %v982_v23 = vadd.f32 %v2122_v29, %v981_v58  ;;  %v1055_v26 = vpack.c.bf16 %v2136_v8, %v2134_v22  ;;  %v1140_v35 = vpop.trf.xlu0 }
 0x395   : > { %1065 = vmatprep.subr.bf16.mxu0 %v1050_v48  ;;  %v1011_v36 = vrot.slane %v1010_v16, 4  ;;  %v1129_v48 = vld [vmem:[#allocation2 + $0x18] sm:$0xff]  ;;  %v2138_v50 = vpop.eup %2137 }
 0x396   : > { %v983_v28 = vadd.f32 %v2124_v53, %v982_v23  ;;  %v974_v44 = vmul.f32 %v2138_v50, %v802_v27  ;;  %v1108_v53 = vrot.slane %v2138_v50, %v2519_v2 }
 0x397   : > { %v1012_v33 = vadd.f32 %v1011_v36, %v1010_v16 }
 0x398   : > { %1066 = vmatpush1.bf16.msra.mxu0 %v1049_v46  ;;  %v984_v52 = vadd.f32 %v2126_v24, %v983_v28  ;;  %v1141_v13 = vpop.trf.xlu0  ;;  %v1112_v24 = vrot.slane %v2138_v50, %v2510_v60  ;;  %v1102_v46 = vld [vmem:[#allocation3 + $0x10] sm:$0xff] }
 0x399   : > { %1067 = vmatprep.subr.bf16.mxu0 %v1052_v6  ;;  %v1013_v54 = vrot.slane %v1012_v33, 2  ;;  %v1117_v7 = vmul.f32 %v1108_v53, %v1102_v46 }
 0x39a   : > { %v985_v1 = vadd.f32 %v2128_v55, %v984_v52  ;;  %v1115_v55 = vmul.f32 %v1108_v53, %v1100_v56  ;;  %v1116_v11 = vmul.f32 %v1112_v24, %v1101_v31 }
 0x39b   : > { %v1014_v40 = vadd.f32 %v1013_v54, %v1012_v33 }
 0x39c   : > { %1068 = vmatpush1.bf16.msra.mxu0 %v1051_v18  ;;  %v986_v17 = vadd.f32 %v2130_v63, %v985_v1  ;;  %v1142_v21 = vpop.trf.xlu0 }
 0x39d   : > { %1069 = vmatprep.subr.bf16.mxu0 %v1054_v3  ;;  %v1015_v3 = vrot.slane %v1014_v40, 1 }
 0x39e   : > { %v987_v15 = vadd.f32 %v2132_v19, %v986_v17 }
 0x3a0   : > { %1070 = vmatpush1.bf16.msra.mxu0 %v1053_v57  ;;  %v988_v9 = vadd.f32 %v2134_v22, %v987_v15  ;;  %v1143_v29 = vpop.trf.xlu0 }
 0x3a1   : > { %1071 = vmatprep.subr.bf16.mxu0 %v1056_v20  ;;  %v1016_v20 = vadd.f32 %v1015_v3, %v1014_v40 }
 0x3a2   : > { %v989_v25 = vadd.f32 %v2136_v8, %v988_v9 }
 0x3a4   : > { %v990_v6 = vrot.slane %v989_v25, 4  ;;  %1072 = vmatpush1.bf16.msra.mxu0 %v1055_v26  ;;  %v1144_v38 = vpop.trf.xlu0 }
 0x3a5   : > { %1170 = vmatprep.subr.bf16.mxu0 %v1129_v48 }
 0x3a6   : > { %v991_v10 = vadd.f32 %v990_v6, %v989_v25 }
 0x3a7   : > { %1090 = vmatmul.mubr.bf16.vlgmr.msra.gmra.mrb[0].mxu0 %v643_v45 }
 0x3a8   : > { %v992_v14 = vrot.slane %v991_v10, 2  ;;  %1171 = vmatpush1.bf16.msra.mxu0 %v1128_v47  ;;  %1202 = vmatprep.mubr.bf16.mxu0 %v2254_v30  ;;  %v1145_v51 = vpop.trf.xlu0 }
 0x3aa   : > { %v993_v59 = vadd.f32 %v992_v14, %v991_v10 }
 0x3ac   : > { %v994_v49 = vrot.slane %v993_v59, 1 }
 0x3ae   : > { %v995_v4 = vadd.f32 %v994_v49, %v993_v59 }
 0x3af   : > { %1986 = vmatmul.mubr.msk.bf16.vlgmr.msra.gmra.mrb[4].mxu0 %vm663_vm4, %v1138_v0 }
 0x3b0   : > { %v1019_v61 = vcombine.low %v995_v4, %v1016_v20  ;;  %1212 = vmatprep.mubr.bf16.mxu0 %v2254_v30 }
 0x3b2   : > { %v1026_v41 = vrot.slane %v1019_v61, %v2504_v37 }
 0x3b4   : > { %v1033_v45 = vrot.slane %v1026_v41, %v2504_v37 }
 0x3b6   : > { %v1035_v5 = vadd.f32 %v1033_v45, %v974_v44 }
 0x3b7   : > { %1987 = vmatmul.mubr.msk.bf16.gmra.mrb[8].mxu0 %vm663_vm4, %v1139_v32 }
 0x3b8   : > { %1040 = vst.msk [vmem:[#allocation5] ss:$2 sm:$0x3] %vm2512_vm5, %v1035_v5  ;;  %1222 = vmatprep.mubr.bf16.mxu0 %v2254_v30 }
 0x3bf   : > { %1988 = vmatmul.mubr.msk.bf16.gmra.mrb[12].mxu0 %vm663_vm4, %v1140_v35 }
 0x3c0   : > { %1232 = vmatprep.mubr.bf16.mxu0 %v2254_v30 }
 0x3c7   : > { %1989 = vmatmul.mubr.msk.bf16.gmra.mrb[16].mxu0 %vm663_vm4, %v1141_v13 }
 0x3c8   : > { %1242 = vmatprep.mubr.bf16.mxu0 %v2254_v30 }
 0x3cf   : > { %1990 = vmatmul.mubr.msk.bf16.gmra.mrb[20].mxu0 %vm663_vm4, %v1142_v21 }
 0x3d0   : > { %1252 = vmatprep.mubr.bf16.mxu0 %v2254_v30 }
 0x3d7   : > { %1991 = vmatmul.mubr.msk.bf16.gmra.mrb[24].mxu0 %vm663_vm4, %v1143_v29 }
 0x3d8   : > { %1262 = vmatprep.mubr.bf16.mxu0 %v2254_v30 }
 0x3df   : > { %1992 = vmatmul.mubr.msk.bf16.gmra.mrb[28].mxu0 %vm663_vm4, %v1144_v38 }
 0x3e0   : > { %1272 = vmatprep.mubr.bf16.mxu0 %v2254_v30  ;;  %v1118_v30 = vmul.f32 %v1112_v24, %v1103_v12 }
 0x3e7   : > { %1993 = vmatmul.mubr.msk.bf16.gmra.mrb[32].mxu0 %vm663_vm4, %v1145_v51 }
 0x47a   : > { %v1091_v63 = vpop.f32.mrb[0].mxu0 }
 0x47b   : > { %v1119_v18 = vadd.f32 %v1115_v55, %v1091_v63  ;;  %v1093_v19 = vpop.f32.mrb[1].mxu0 }
 0x47c   : > { %v1120_v22 = vadd.f32 %v1116_v11, %v1093_v19  ;;  %v1095_v58 = vpop.f32.mrb[2].mxu0 }
 0x47d   : > { %1123 = vst [vmem:[#allocation3] sm:$0xff] %v1119_v18  ;;  %v1121_v57 = vadd.f32 %v1117_v7, %v1095_v58  ;;  %v1097_v8 = vpop.f32.mrb[3].mxu0 }
 0x47e   : > { %1124 = vst [vmem:[#allocation3 + $0x8] sm:$0xff] %v1120_v22  ;;  %v1122_v16 = vadd.f32 %v1118_v30, %v1097_v8 }
 0x47f   : > { %1125 = vst [vmem:[#allocation3 + $0x10] sm:$0xff] %v1121_v57 }
 0x480   : > { %1126 = vst [vmem:[#allocation3 + $0x18] sm:$0xff] %v1122_v16 }
 0x482   : > { %v2684_v23 = vpop.f32.mrb[4].mxu0 }
 0x483   : > { %v2686_v26 = vpop.f32.mrb[5].mxu0 }
 0x484   : > { %v2688_v28 = vpop.f32.mrb[6].mxu0 }
 0x485   : > { %v2690_v36 = vpop.f32.mrb[7].mxu0 }
 0x48a   : > { %v2692_v52 = vpop.f32.mrb[8].mxu0 }
 0x48b   : > { %v1287_v1 = vmax.f32 %v2684_v23, %v2692_v52  ;;  %v2696_v33 = vpop.f32.mrb[9].mxu0 }
 0x48c   : > { %v1308_v17 = vmax.f32 %v2686_v26, %v2696_v33  ;;  %v2700_v15 = vpop.f32.mrb[10].mxu0 }
 0x48d   : > { %v1288_v54 = vmax.f32 %v2688_v28, %v2700_v15  ;;  %v2704_v9 = vpop.f32.mrb[11].mxu0 }
 0x48e   : > { %v1309_v25 = vmax.f32 %v2690_v36, %v2704_v9 }
 0x492   : > { %v2708_v48 = vpop.f32.mrb[12].mxu0 }
 0x493   : > { %v1289_v34 = vmax.f32 %v1287_v1, %v2708_v48  ;;  %v2711_v40 = vpop.f32.mrb[13].mxu0 }
 0x494   : > { %v1310_v6 = vmax.f32 %v1308_v17, %v2711_v40  ;;  %v2714_v47 = vpop.f32.mrb[14].mxu0 }
 0x495   : > { %v1290_v10 = vmax.f32 %v1288_v54, %v2714_v47  ;;  %v2717_v3 = vpop.f32.mrb[15].mxu0 }
 0x496   : > { %v1311_v14 = vmax.f32 %v1309_v25, %v2717_v3 }
 0x49a   : > { %v2720_v59 = vpop.f32.mrb[16].mxu0 }
 0x49b   : > { %v1291_v20 = vmax.f32 %v1289_v34, %v2720_v59  ;;  %v2723_v49 = vpop.f32.mrb[17].mxu0 }
 0x49c   : > { %v1312_v0 = vmax.f32 %v1310_v6, %v2723_v49  ;;  %v2726_v4 = vpop.f32.mrb[18].mxu0 }
 0x49d   : > { %v1292_v61 = vmax.f32 %v1290_v10, %v2726_v4  ;;  %v2729_v50 = vpop.f32.mrb[19].mxu0 }
 0x49e   : > { %v1313_v27 = vmax.f32 %v1311_v14, %v2729_v50 }
 0x4a2   : > { %v2732_v41 = vpop.f32.mrb[20].mxu0 }
 0x4a3   : > { %v1293_v44 = vmax.f32 %v1291_v20, %v2732_v41  ;;  %v2735_v45 = vpop.f32.mrb[21].mxu0 }
 0x4a4   : > { %v1314_v32 = vmax.f32 %v1312_v0, %v2735_v45  ;;  %v2738_v5 = vpop.f32.mrb[22].mxu0 }
 0x4a5   : > { %v1294_v35 = vmax.f32 %v1292_v61, %v2738_v5  ;;  %v2741_v13 = vpop.f32.mrb[23].mxu0 }
 0x4a6   : > { %v1315_v21 = vmax.f32 %v1313_v27, %v2741_v13 }
 0x4aa   : > { %v2744_v29 = vpop.f32.mrb[24].mxu0 }
 0x4ab   : > { %v1295_v38 = vmax.f32 %v1293_v44, %v2744_v29  ;;  %v2747_v51 = vpop.f32.mrb[25].mxu0 }
 0x4ac   : > { %v1316_v53 = vmax.f32 %v1314_v32, %v2747_v51  ;;  %v2750_v56 = vpop.f32.mrb[26].mxu0 }
 0x4ad   : > { %v1296_v24 = vmax.f32 %v1294_v35, %v2750_v56  ;;  %v2753_v31 = vpop.f32.mrb[27].mxu0 }
 0x4ae   : > { %v1317_v46 = vmax.f32 %v1315_v21, %v2753_v31 }
 0x4b2   : > { %v2756_v55 = vpop.f32.mrb[28].mxu0 }
 0x4b3   : > { %v1297_v12 = vmax.f32 %v1295_v38, %v2756_v55  ;;  %v2759_v63 = vpop.f32.mrb[29].mxu0 }
 0x4b4   : > { %v1318_v11 = vmax.f32 %v1316_v53, %v2759_v63  ;;  %v2762_v18 = vpop.f32.mrb[30].mxu0 }
 0x4b5   : > { %v1298_v19 = vmax.f32 %v1296_v24, %v2762_v18  ;;  %v2765_v7 = vpop.f32.mrb[31].mxu0 }
 0x4b6   : > { %v1319_v22 = vmax.f32 %v1317_v46, %v2765_v7  ;;  %v2781_v46 = vld [vmem:[#allocation4 + $0x1] ss:$2 sm:$0x3] }
 0x4ba   : > { %v2768_v58 = vpop.f32.mrb[32].mxu0 }
 0x4bb   : > { %v1299_v30 = vmax.f32 %v1297_v12, %v2768_v58  ;;  %v2771_v57 = vpop.f32.mrb[33].mxu0 }
 0x4bc   : > { %v1320_v8 = vmax.f32 %v1318_v11, %v2771_v57  ;;  %v2774_v16 = vpop.f32.mrb[34].mxu0 }
 0x4bd   : > { %v1300_v1 = vmax.f32 %v1298_v19, %v2774_v16  ;;  %v2777_v17 = vpop.f32.mrb[35].mxu0 }
 0x4be   : > { %v1321_v54 = vmax.f32 %v1319_v22, %v2777_v17 }
 0x4bf   : > { %v1301_v25 = vmax.f32 %v1299_v30, %v1300_v1 }
 0x4c0   : > { %v1322_v34 = vmax.f32 %v1320_v8, %v1321_v54 }
 0x4c1   : > { %v1302_v6 = vrot.slane %v1301_v25, 4 }
 0x4c2   : > { %v1323_v10 = vrot.slane %v1322_v34, 4 }
 0x4c3   : > { %v1303_v14 = vmax.f32 %v1301_v25, %v1302_v6 }
 0x4c4   : > { %v1324_v20 = vmax.f32 %v1322_v34, %v1323_v10 }
 0x4c5   : > { %v1304_v0 = vrot.slane %v1303_v14, 2 }
 0x4c6   : > { %v1325_v61 = vrot.slane %v1324_v20, 2 }
 0x4c7   : > { %v1305_v27 = vmax.f32 %v1303_v14, %v1304_v0 }
 0x4c8   : > { %v1326_v44 = vmax.f32 %v1324_v20, %v1325_v61 }
 0x4c9   : > { %v1306_v32 = vrot.slane %v1305_v27, 1 }
 0x4ca   : > { %v1327_v35 = vrot.slane %v1326_v44, 1 }
 0x4cb   : > { %v1307_v21 = vmax.f32 %v1305_v27, %v1306_v32 }
 0x4cc   : > { %v1328_v38 = vmax.f32 %v1326_v44, %v1327_v35 }
 0x4ce   : > { %v1331_v53 = vcombine.low %v1307_v21, %v1328_v38 }
 0x4d0   : > { %v1338_v24 = vrot.slane %v1331_v53, %v2504_v37 }
 0x4d2   : > { %v1345_v12 = vrot.slane %v1338_v24, %v2504_v37 }
 0x4d4   : > { %v2785_v11 = vmax.f32 %v2781_v46, %v1345_v12 }
 0x4d6   : > { %v1348_v19 = vsub.f32 %v2781_v46, %v2785_v11  ;;  %v1359_v22 = vrot.slane %v2785_v11, %v2510_v60  ;;  %1607 = vst.msk [vmem:[#allocation4 + $0x1] ss:$2 sm:$0x3] %vm2512_vm5, %v2785_v11  ;;  %v2796_v30 = vrot.slane %v2785_v11, %v2519_v2 }
 0x4d8   : > { %v1363_v8 = vsub.f32 %v2686_v26, %v1359_v22  ;;  %v1365_v1 = vsub.f32 %v2690_v36, %v1359_v22  ;;  %v1367_v54 = vsub.f32 %v2696_v33, %v1359_v22  ;;  %v1369_v25 = vsub.f32 %v2704_v9, %v1359_v22 }
 0x4d9   : > { %v1371_v34 = vsub.f32 %v2711_v40, %v1359_v22  ;;  %v1373_v6 = vsub.f32 %v2717_v3, %v1359_v22  ;;  %v1375_v10 = vsub.f32 %v2723_v49, %v1359_v22  ;;  %v1377_v14 = vsub.f32 %v2729_v50, %v1359_v22 }
 0x4da   : > { %v1379_v20 = vsub.f32 %v2735_v45, %v1359_v22  ;;  %v1381_v0 = vsub.f32 %v2741_v13, %v1359_v22  ;;  %v1383_v26 = vsub.f32 %v2747_v51, %v1359_v22  ;;  %v1385_v36 = vsub.f32 %v2753_v31, %v1359_v22 }
 0x4db   : > { %v1387_v33 = vsub.f32 %v2759_v63, %v1359_v22  ;;  %v1389_v9 = vsub.f32 %v2765_v7, %v1359_v22  ;;  %v1391_v40 = vsub.f32 %v2771_v57, %v1359_v22  ;;  %v1393_v3 = vsub.f32 %v2777_v17, %v1359_v22 }
 0x4dc   : > { %v1396_v61 = vmul.f32 1.442695, %v1363_v8  ;;  %v1400_v49 = vmul.f32 1.442695, %v1365_v1  ;;  %v1404_v27 = vmul.f32 1.442695, %v1367_v54  ;;  %v1362_v45 = vsub.f32 %v2684_v23, %v2796_v30 }
 0x4dd   : > { %v1408_v50 = vmul.f32 1.442695, %v1369_v25  ;;  %v1412_v13 = vmul.f32 1.442695, %v1371_v34  ;;  %v1416_v51 = vmul.f32 1.442695, %v1373_v6  ;;  %v1364_v7 = vsub.f32 %v2688_v28, %v2796_v30 }
 0x4de   : > { %2139 = vpow2.f32 %v1396_v61  ;;  %v1420_v31 = vmul.f32 1.442695, %v1375_v10  ;;  %v1424_v63 = vmul.f32 1.442695, %v1377_v14  ;;  %v1428_v57 = vmul.f32 1.442695, %v1379_v20 }
 0x4df   : > { %2141 = vpow2.f32 %v1400_v49  ;;  %v1366_v17 = vsub.f32 %v2692_v52, %v2796_v30  ;;  %v1368_v44 = vsub.f32 %v2700_v15, %v2796_v30  ;;  %v1432_v23 = vmul.f32 1.442695, %v1381_v0 }
 0x4e0   : > { %2143 = vpow2.f32 %v1404_v27  ;;  %v1370_v32 = vsub.f32 %v2708_v48, %v2796_v30  ;;  %v1372_v35 = vsub.f32 %v2714_v47, %v2796_v30  ;;  %v1436_v21 = vmul.f32 1.442695, %v1383_v26 }
 0x4e1   : > { %2145 = vpow2.f32 %v1408_v50  ;;  %v1374_v28 = vsub.f32 %v2720_v59, %v2796_v30  ;;  %v1440_v38 = vmul.f32 1.442695, %v1385_v36  ;;  %v1376_v52 = vsub.f32 %v2726_v4, %v2796_v30 }
 0x4e2   : > { %2147 = vpow2.f32 %v1412_v13  ;;  %v1444_v15 = vmul.f32 1.442695, %v1387_v33  ;;  %v1378_v53 = vsub.f32 %v2732_v41, %v2796_v30  ;;  %v1380_v48 = vsub.f32 %v2738_v5, %v2796_v30 }
 0x4e3   : > { %2149 = vpow2.f32 %v1416_v51  ;;  %v1448_v47 = vmul.f32 1.442695, %v1389_v9  ;;  %v1382_v24 = vsub.f32 %v2744_v29, %v2796_v30  ;;  %v1384_v59 = vsub.f32 %v2750_v56, %v2796_v30 }
 0x4e4   : > { %2151 = vpow2.f32 %v1420_v31  ;;  %v1452_v22 = vmul.f32 1.442695, %v1391_v40  ;;  %v1386_v4 = vsub.f32 %v2756_v55, %v2796_v30  ;;  %v1456_v41 = vmul.f32 1.442695, %v1393_v3 }
 0x4e5   : > { %2153 = vpow2.f32 %v1424_v63  ;;  %v1388_v5 = vsub.f32 %v2762_v18, %v2796_v30  ;;  %v1394_v25 = vmul.f32 1.442695, %v1362_v45  ;;  %v1398_v56 = vmul.f32 1.442695, %v1364_v7 }
 0x4e6   : > { %2155 = vpow2.f32 %v1428_v57  ;;  %v1390_v6 = vsub.f32 %v2768_v58, %v2796_v30  ;;  %v1392_v55 = vsub.f32 %v2774_v16, %v2796_v30  ;;  %v1402_v20 = vmul.f32 1.442695, %v1366_v17 }
 0x4e7   : > { %2157 = vpow2.f32 %v1432_v23  ;;  %v1406_v26 = vmul.f32 1.442695, %v1368_v44  ;;  %v1410_v30 = vmul.f32 1.442695, %v1370_v32  ;;  %v1414_v9 = vmul.f32 1.442695, %v1372_v35 }
 0x4e8   : > { %v2140_v12 = vpop.eup %2139  ;;  %2159 = vpow2.f32 %v1436_v21  ;;  %v1418_v49 = vmul.f32 1.442695, %v1374_v28  ;;  %v1422_v50 = vmul.f32 1.442695, %v1376_v52  ;;  %v1426_v31 = vmul.f32 1.442695, %v1378_v53 }
 0x4e9   : > { %v2142_v8 = vpop.eup %2141  ;;  %2161 = vpow2.f32 %v1440_v38  ;;  %v1430_v7 = vmul.f32 1.442695, %v1380_v48  ;;  %v1434_v23 = vmul.f32 1.442695, %v1382_v24  ;;  %v1438_v35 = vmul.f32 1.442695, %v1384_v59 }
 0x4ea   : > { %v2842_v1 = vpop.eup %2143  ;;  %2163 = vpow2.f32 %v1444_v15  ;;  %v1480_v54 = vadd.f32 %v2142_v8, %v2140_v12  ;;  %v1522_v29 = vpack.c.bf16 %v2142_v8, %v2140_v12  ;;  %v1442_v52 = vmul.f32 1.442695, %v1386_v4 }
 0x4eb   : > { %v2844_v34 = vpop.eup %2145  ;;  %2165 = vpow2.f32 %v1448_v47  ;;  %v1446_v53 = vmul.f32 1.442695, %v1388_v5  ;;  %v1450_v59 = vmul.f32 1.442695, %v1390_v6 }
 0x4ec   : > { %v2850_v10 = vpop.eup %2147  ;;  %2167 = vpow2.f32 %v1452_v22  ;;  %v1481_v18 = vadd.f32 %v2842_v1, %v1480_v54  ;;  %1537 = vmatprep.subr.bf16.mxu1 %v1522_v29  ;;  %v1524_v14 = vpack.c.bf16 %v2844_v34, %v2842_v1  ;;  %v1454_v22 = vmul.f32 1.442695, %v1392_v55 }
 0x4ed   : > { %v2855_v0 = vpop.eup %2149  ;;  %2169 = vpow2.f32 %v1456_v41 }
 0x4ee   : > { %v2857_v36 = vpop.eup %2151  ;;  %v1482_v58 = vadd.f32 %v2844_v34, %v1481_v18  ;;  %2171 = vpow2.f32 %v1394_v25  ;;  %v1526_v16 = vpack.c.bf16 %v2855_v0, %v2850_v10 }
 0x4ef   : > { %v2862_v33 = vpop.eup %2153  ;;  %2173 = vpow2.f32 %v1398_v56 }
 0x4f0   : > { %v2864_v40 = vpop.eup %2155  ;;  %v1483_v3 = vadd.f32 %v2850_v10, %v1482_v58  ;;  %2175 = vpow2.f32 %v1402_v20  ;;  %v1528_v61 = vpack.c.bf16 %v2862_v33, %v2857_v36 }
 0x4f1   : > { %v2869_v27 = vpop.eup %2157  ;;  %2177 = vpow2.f32 %v1406_v26 }
 0x4f2   : > { %v2871_v45 = vpop.eup %2159  ;;  %v1484_v13 = vadd.f32 %v2855_v0, %v1483_v3  ;;  %2179 = vpow2.f32 %v1410_v30  ;;  %v1530_v51 = vpack.c.bf16 %v2869_v27, %v2864_v40 }
 0x4f3   : > { %v2876_v63 = vpop.eup %2161  ;;  %2181 = vpow2.f32 %v1414_v9 }
 0x4f4   : > { %v2878_v57 = vpop.eup %2163  ;;  %v1485_v17 = vadd.f32 %v2857_v36, %v1484_v13  ;;  %2183 = vpow2.f32 %v1418_v49  ;;  %v1532_v44 = vpack.c.bf16 %v2876_v63, %v2871_v45 }
 0x4f5   : > { %v2883_v32 = vpop.eup %2165  ;;  %2185 = vpow2.f32 %v1422_v50 }
 0x4f6   : > { %v2885_v21 = vpop.eup %2167  ;;  %v1486_v28 = vadd.f32 %v2862_v33, %v1485_v17  ;;  %2187 = vpow2.f32 %v1426_v31  ;;  %v1534_v38 = vpack.c.bf16 %v2883_v32, %v2878_v57 }
 0x4f7   : > { %v2890_v15 = vpop.eup %2169  ;;  %2189 = vpow2.f32 %v1430_v7 }
 0x4f8   : > { %v2172_v48 = vpop.eup %2171  ;;  %v1487_v47 = vadd.f32 %v2864_v40, %v1486_v28  ;;  %2191 = vpow2.f32 %v1434_v23  ;;  %v1536_v24 = vpack.c.bf16 %v2890_v15, %v2885_v21 }
 0x4f9   : > { %v2174_v12 = vpop.eup %2173  ;;  %2193 = vpow2.f32 %v1438_v35 }
 0x4fa   : > { %v2176_v8 = vpop.eup %2175  ;;  %v1488_v41 = vadd.f32 %v2869_v27, %v1487_v47  ;;  %v1459_v54 = vadd.f32 %v2174_v12, %v2172_v48  ;;  %v1521_v4 = vpack.c.bf16 %v2174_v12, %v2172_v48  ;;  %2195 = vpow2.f32 %v1442_v52 }
 0x4fb   : > { %v2178_v29 = vpop.eup %2177  ;;  %2197 = vpow2.f32 %v1446_v53 }
 0x4fc   : > { %v2180_v5 = vpop.eup %2179  ;;  %v1489_v25 = vadd.f32 %v2871_v45, %v1488_v41  ;;  %1538 = vmatpush1.bf16.msra.mxu1 %v1521_v4  ;;  %v1460_v56 = vadd.f32 %v2176_v8, %v1459_v54  ;;  %v1523_v18 = vpack.c.bf16 %v2178_v29, %v2176_v8  ;;  %2199 = vpow2.f32 %v1450_v59 }
 0x4fd   : > { %v2182_v20 = vpop.eup %2181  ;;  %1539 = vmatprep.subr.bf16.mxu1 %v1524_v14  ;;  %2201 = vpow2.f32 %v1454_v22  ;;  %v1349_v45 = vmul.f32 1.442695, %v1348_v19 }
 0x4fe   : > { %v2184_v6 = vpop.eup %2183  ;;  %v1490_v55 = vadd.f32 %v2876_v63, %v1489_v25  ;;  %v1461_v26 = vadd.f32 %v2178_v29, %v1460_v56  ;;  %v1525_v58 = vpack.c.bf16 %v2182_v20, %v2180_v5  ;;  %v1581_v56 = vld [vmem:[#allocation3 + $0x28] sm:$0xff] }
 0x4ff   : > { %v2186_v30 = vpop.eup %2185  ;;  %2203 = vpow2.f32 %v1349_v45 }
 0x500   : > { %v2188_v9 = vpop.eup %2187  ;;  %v1491_v3 = vadd.f32 %v2878_v57, %v1490_v55  ;;  %1540 = vmatpush1.bf16.msra.mxu1 %v1523_v18  ;;  %v1462_v49 = vadd.f32 %v2180_v5, %v1461_v26  ;;  %v1527_v50 = vpack.c.bf16 %v2186_v30, %v2184_v6  ;;  %v1286_v5 = vld [vmem:[#allocation5 + $0x1] ss:$2 sm:$0x3]  ;;  %v1582_v18 = vld [vmem:[#allocation3 + $0x30] sm:$0xff] }
 0x501   : > { %v2190_v13 = vpop.eup %2189  ;;  %1541 = vmatprep.subr.bf16.mxu1 %v1526_v16 }
 0x502   : > { %v2192_v1 = vpop.eup %2191  ;;  %v1492_v34 = vadd.f32 %v2883_v32, %v1491_v3  ;;  %v1463_v14 = vadd.f32 %v2182_v20, %v1462_v49  ;;  %v1529_v31 = vpack.c.bf16 %v2190_v13, %v2188_v9 }
 0x503   : > { %v2194_v7 = vpop.eup %2193 }
 0x504   : > { %v2196_v17 = vpop.eup %2195  ;;  %v1493_v23 = vadd.f32 %v2885_v21, %v1492_v34  ;;  %1542 = vmatpush1.bf16.msra.mxu1 %v1525_v58  ;;  %v1464_v35 = vadd.f32 %v2184_v6, %v1463_v14  ;;  %v1531_v28 = vpack.c.bf16 %v2194_v7, %v2192_v1  ;;  %v1583_v6 = vld [vmem:[#allocation3 + $0x38] sm:$0xff]  ;;  %v2256_v14 = vmov (!%p1994_p8), 0  }
 0x505   : > { %v2198_v52 = vpop.eup %2197  ;;  %1543 = vmatprep.subr.bf16.mxu1 %v1528_v61  ;;  %1711 = vmatprep.mubr.bf16.mxu0 (!%p1994_p8), %v2256_v14 }
 0x506   : > { %v2200_v53 = vpop.eup %2199  ;;  %v1494_v10 = vadd.f32 %v2890_v15, %v1493_v23  ;;  %v1465_v0 = vadd.f32 %v2186_v30, %v1464_v35  ;;  %v1533_v16 = vpack.c.bf16 %v2198_v52, %v2196_v17  ;;  %2205 = vset.pattern.permute.xlu0 (!%p1994_p8), %v2256_v14  ;;  %v1615_v35 = vld [vmem:[#allocation3] sm:$0xff] (!%p1994_p8) }
 0x507   : > { %v2202_v48 = vpop.eup %2201 }
 0x508   : > { %1544 = vmatpush1.bf16.msra.mxu1 %v1527_v50  ;;  %v1466_v47 = vadd.f32 %v2188_v9, %v1465_v0  ;;  %v1535_v59 = vpack.c.bf16 %v2202_v48, %v2200_v53  ;;  %v1495_v22 = vrot.slane %v1494_v10, 4 }
 0x509   : > { %1545 = vmatprep.subr.bf16.mxu1 %v1530_v51  ;;  %v2204_v29 = vpop.eup %2203 }
 0x50a   : > { %v1467_v12 = vadd.f32 %v2190_v13, %v1466_v47  ;;  %v1496_v33 = vadd.f32 %v1495_v22, %v1494_v10  ;;  %v1458_v11 = vmul.f32 %v2204_v29, %v1286_v5  ;;  %v1588_v39 = vrot.slane %v2204_v29, %v2519_v2 }
 0x50c   : > { %1546 = vmatpush1.bf16.msra.mxu1 %v1529_v31  ;;  %v1468_v8 = vadd.f32 %v2192_v1, %v1467_v12  ;;  %v1497_v54 = vrot.slane %v1496_v33, 2  ;;  %v1595_v20 = vmul.f32 %v1588_v39, %v1580_v42  ;;  %v1597_v9 = vmul.f32 %v1588_v39, %v1582_v18  ;;  %v1612_v1 = vld [vmem:[#allocation5] ss:$2 sm:$0x3] (!%p1994_p8)  ;;  %v1669_v31 = vld [vmem:[%s2982_s5] sm:$0xf] (!%p1994_p8) }
 0x50d   : > { %1547 = vmatprep.subr.bf16.mxu1 %v1532_v44  ;;  %2207 = vrcp.f32 (!%p1994_p8), %v1612_v1  ;;  %1672 = vperm.xlu0 (!%p1994_p8), %2205, %v1669_v31  }
 0x50e   : > { %v1469_v36 = vadd.f32 %v2194_v7, %v1468_v8  ;;  %v1498_v51 = vadd.f32 %v1497_v54, %v1496_v33  ;;  %v1616_v7 = vld [vmem:[#allocation3 + $0x8] sm:$0xff] (!%p1994_p8) }
 0x510   : > { %1548 = vmatpush1.bf16.msra.mxu1 %v1531_v28  ;;  %v1470_v61 = vadd.f32 %v2196_v17, %v1469_v36  ;;  %v1499_v57 = vrot.slane %v1498_v51, 1  ;;  %v1618_v17 = vld [vmem:[#allocation3 + $0x18] sm:$0xff] (!%p1994_p8)  ;;  %v1617_v28 = vld [vmem:[#allocation3 + $0x10] sm:$0xff] (!%p1994_p8) }
 0x511   : > { %1549 = vmatprep.subr.bf16.mxu1 %v1534_v38 }
 0x512   : > { %v1471_v41 = vadd.f32 %v2198_v52, %v1470_v61  ;;  %v1500_v4 = vadd.f32 %v1499_v57, %v1498_v51 }
 0x514   : > { %1550 = vmatpush1.bf16.msra.mxu1 %v1533_v16  ;;  %v1472_v40 = vadd.f32 %v2200_v53, %v1471_v41 }
 0x515   : > { %1551 = vmatprep.subr.bf16.mxu1 %v1536_v24 }
 0x516   : > { %v1473_v27 = vadd.f32 %v2202_v48, %v1472_v40 }
 0x517   : > { %v2208_v23 = vpop.eup (!%p1994_p8), %2207 }
 0x518   : > { %v1474_v63 = vrot.slane %v1473_v27, 4  ;;  %1552 = vmatpush1.bf16.msra.mxu1 %v1535_v59  ;;  %v1627_v10 = vrot.slane (!%p1994_p8), %v2208_v23, %v2510_v60  ;;  %v1623_v0 = vrot.slane (!%p1994_p8), %v2208_v23, %v2519_v2 }
 0x51a   : > { %v1475_v44 = vadd.f32 %v1474_v63, %v1473_v27  ;;  %v1631_v22 = vmul.f32 (!%p1994_p8), %v1627_v10, %v1616_v7  ;;  %v1633_v8 = vmul.f32 (!%p1994_p8), %v1627_v10, %v1618_v17  ;;  %v1630_v36 = vmul.f32 (!%p1994_p8), %v1623_v0, %v1615_v35 }
 0x51b   : > { %1570 = vmatmul.mubr.bf16.vlgmr.msra.gmra.mrb[40].mxu1 %v644_v43  ;;  %v1592_v43 = vrot.slane %v2204_v29, %v2510_v60  ;;  %v1632_v33 = vmul.f32 (!%p1994_p8), %v1623_v0, %v1617_v28 }
 0x51c   : > { %v1476_v32 = vrot.slane %v1475_v44, 2  ;;  %v1635_v27 = vpack.c.bf16 (!%p1994_p8), %v1633_v8, %v1631_v22 }
 0x51d   : > { %v1596_v26 = vmul.f32 %v1592_v43, %v1581_v56  ;;  %v1598_v49 = vmul.f32 %v1592_v43, %v1583_v6  ;;  %v1634_v45 = vpack.c.bf16 (!%p1994_p8), %v1632_v33, %v1630_v36 }
 0x51e   : > { %v1477_v38 = vadd.f32 %v1476_v32, %v1475_v44  ;;  %1637 = vst [vmem:[#allocation2 + $0x8] sm:$0xff] (!%p1994_p8), %v1635_v27  ;;  %1679 = vmatprep.subr.bf16.mxu0 (!%p1994_p8), %v1635_v27  ;;  %v1722_v44 = vld [vmem:[%s2339_s17] sm:$0xff] (!%p1994_p8) }
 0x51f   : > { %1636 = vst [vmem:[#allocation2] sm:$0xff] (!%p1994_p8), %v1634_v45  ;;  %1680 = vmatpush1.bf16.msra.mxu0 (!%p1994_p8), %v1634_v45 }
 0x520   : > { %v1478_v21 = vrot.slane %v1477_v38, 1 }
 0x522   : > { %v1479_v15 = vadd.f32 %v1478_v21, %v1477_v38  ;;  %v1724_v21 = vcombine.high (!%p1994_p8), %v1722_v44, %v1722_v44 }
 0x524   : > { %v1503_v24 = vcombine.low %v1479_v15, %v1500_v4 }
 0x526   : > { %v1510_v46 = vrot.slane %v1503_v24, %v2504_v37 }
 0x528   : > { %v1517_v19 = vrot.slane %v1510_v46, %v2504_v37 }
 0x52a   : > { %v1519_v25 = vadd.f32 %v1517_v19, %v1458_v11 }
 0x52c   : > { %1520 = vst.msk [vmem:[#allocation5 + $0x1] ss:$2 sm:$0x3] %vm2512_vm5, %v1519_v25 }
 0x533   : > { %v1638_v34 = vld [vmem:[#allocation5 + $0x1] ss:$2 sm:$0x3] (!%p1994_p8) }
 0x534   : > { %2209 = vrcp.f32 (!%p1994_p8), %v1638_v34 }
 0x53e   : > { %v2210_v53 = vpop.eup (!%p1994_p8), %2209 }
 0x53f   : > { %v1653_v59 = vrot.slane (!%p1994_p8), %v2210_v53, %v2510_v60  ;;  %v1649_v12 = vrot.slane (!%p1994_p8), %v2210_v53, %v2519_v2  ;;  %v1664_v60 = vld [vmem:[%s2981_s4] sm:$0x3] (!%p1994_p8) }
 0x58c   : > { %v1673_v2 = vpop.permute.xlu0 (!%p1994_p8), %1672 }
 0x5ee   : > { %v1571_v55 = vpop.f32.mrb[40].mxu1  ;;  %1611 = sbr.rel (%p1994_p8) target bundleno = 1907 (0x773), region = 52 }
 0x5ef   : > { %v1599_v58 = vadd.f32 %v1595_v20, %v1571_v55  ;;  %v1573_v30 = vpop.f32.mrb[41].mxu1 }
 0x5f0   : > { %v1600_v3 = vadd.f32 %v1596_v26, %v1573_v30  ;;  %v1575_v37 = vpop.f32.mrb[42].mxu1 }
 0x5f1   : > { %1603 = vst [vmem:[#allocation3 + $0x20] sm:$0xff] %v1599_v58  ;;  %v1601_v62 = vadd.f32 %v1597_v9, %v1575_v37  ;;  %v1577_v50 = vpop.f32.mrb[43].mxu1 }
 0x5f2   : > { %1604 = vst [vmem:[#allocation3 + $0x28] sm:$0xff] %v1600_v3  ;;  %v1602_v13 = vadd.f32 %v1598_v49, %v1577_v50 }
 0x5f3   : > { %1605 = vst [vmem:[#allocation3 + $0x30] sm:$0xff] %v1601_v62 }
 0x5f4   : > { %1606 = vst [vmem:[#allocation3 + $0x38] sm:$0xff] %v1602_v13 }
 0x5f8   : > { %v1641_v48 = vld [vmem:[#allocation3 + $0x20] sm:$0xff] }
 0x5f9   : > { %v1642_v52 = vld [vmem:[#allocation3 + $0x28] sm:$0xff]  ;;  %v1656_v54 = vmul.f32 %v1649_v12, %v1641_v48 }
 0x5fa   : > { %v1643_v47 = vld [vmem:[#allocation3 + $0x30] sm:$0xff]  ;;  %v1657_v61 = vmul.f32 %v1653_v59, %v1642_v52 }
 0x5fb   : > { %v1644_v16 = vld [vmem:[#allocation3 + $0x38] sm:$0xff]  ;;  %v1658_v40 = vmul.f32 %v1649_v12, %v1643_v47 }
 0x5fc   : > { %v1659_v41 = vmul.f32 %v1653_v59, %v1644_v16 }
 0x5fd   : > { %v1660_v63 = vpack.c.bf16 %v1658_v40, %v1656_v54 }
 0x5fe   : > { %v1661_v51 = vpack.c.bf16 %v1659_v41, %v1657_v61 }
 0x5ff   : > { %1662 = vst [vmem:[#allocation2 + $0x10] sm:$0xff] %v1660_v63 }
 0x600   : > { %1663 = vst [vmem:[#allocation2 + $0x18] sm:$0xff] %v1661_v51  ;;  %1681 = vmatprep.subr.bf16.mxu0 %v1661_v51 }
 0x601   : > { %1682 = vmatpush1.bf16.msra.mxu0 %v1660_v63 }
 0x604   : > { %1995 = vmatmul.mubr.msk.bf16.vlgmr.msra.gmra.mrb[0].mxu0 %vm1675_vm6, %v1664_v60 }
 0x6d7   : > { %v1713_v57 = vpop.f32.mrb[0].mxu0 }
 0x6d8   : > { %v1714_v32 = vadd.f32 %v1713_v57, %v1673_v2  ;;  %v1715_v38 = vpop.f32.mrb[1].mxu0 }
 0x6d9   : > { %v1716_v4 = vadd.f32 %v1715_v38, %v1673_v2  ;;  %v1717_v15 = vpop.f32.mrb[2].mxu0 }
 0x6da   : > { %v1720_v24 = vmax.f32 %v1714_v32, 0.0  ;;  %v1718_v29 = vpop.f32.mrb[3].mxu0 }
 0x6db   : > { %v1721_v5 = vmax.f32 %v1716_v4, 0.0 }
 0x6dc   : > { %v1726_v46 = vadd.f32 %v1722_v44, %v1720_v24 }
 0x6dd   : > { %v1727_v11 = vadd.f32 %v1724_v21, %v1721_v5 }
 0x6de   : > { %v1743_v19 = vsel %vm1742_vm7, %v1726_v46, 0.0  ;;  %v1750_v25 = vmul.f32 %v1726_v46, %v1726_v46 }
 0x6df   : > { %v1996_v39 = vpack.c.bf16 %v1727_v11, %v1726_v46  ;;  %v1744_v42 = vsel %vm1742_vm7, %v1727_v11, 0.0  ;;  %v1751_v43 = vmul.f32 %v1727_v11, %v1727_v11 }
 0x6e0   : > { %v1745_v56 = vadd.f32 %v1744_v42, %v1743_v19  ;;  %v1752_v18 = vsel %vm1742_vm7, %v1750_v25, 0.0 }
 0x6e1   : > { %1997 = vst.sshfl [vmem:[%s404_s26] sm:$0x33 pattern:$0x76325410] %v1996_v39  ;;  %v1753_v20 = vsel %vm1742_vm7, %v1751_v43, 0.0 }
 0x6e2   : > { %1746 = vadd.xlane.f32.xlu0 %v1745_v56  ;;  %v1754_v6 = vadd.f32 %v1753_v20, %v1752_v18 }
 0x6e4   : > { %1755 = vadd.xlane.f32.xlu1 %v1754_v6 }
 0x76f   : > { %v1747_v55 = vpop.xlane.xlu0 %1746 }
 0x770   : > { %1749 = vst.msk [vmem:[%s412_s13] sm:$0xf] %vm1748_vm8, %v1747_v55 }
 0x771   : > { %v1756_v26 = vpop.xlane.xlu1 %1755 }
 0x772   : > { %1757 = vst.msk [vmem:[%s419_s28] sm:$0xf] %vm1748_vm8, %v1756_v26 }
 0x773 PF: > { %s19_s9 = sadd.s32 1, %s2249_s9   ;;  %s2989_s26 = sld [smem:[#allocation6_spill]] }
 0x774   : > { %p16_p9 = scmp.ge.s32.totalorder %s19_s9, 6   ;;  %s2990_s27 = smov %s2241_s29 }
 0x775   : > { %s2991_s28 = smov %s2245_s30  ;;  %s2992_s29 = smov %s2995_s10 }
 0x776   :  { %18 = sbr.rel (!%p16_p9) target bundleno = 3 (0x3), region = 111 }
 0x779   : > { %s2993_s30 = smov %s2989_s26 }

</bundles_post_ra>
